<compile_context>
chip_gen: v5e
topology: v5e:2x2
jax: 0.10.0
libtpu: 0.0.40
codegen_flags: <defaults>
</compile_context>

<pallas_src>
import functools

import jax
import jax.numpy as jnp
import numpy as np
from jax import lax
from jax.experimental import pallas as pl
from jax.experimental.pallas import tpu as pltpu


def _seg_head_kernel(xp_ref, w_ref, b_ref, ah_ref, awt_ref, out_ref, *, KH, KW, H, W):
    """One (batch, output-row-tile) grid step.

    xp_ref : (1, Cin, Hp, Wp)   zero-padded input, channel-major
    w_ref  : (Cout, KH*KW*Cin)  im2col conv weights (tap order kh, kw, cin)
    b_ref  : (Cout, 1)          conv bias
    ah_ref : (THO, H)           row-tile slice of bilinear row-interp matrix
    awt_ref: (W, Wo)            bilinear col-interp matrix, pre-transposed (Wo minor)
    out_ref: (1, Cout, THO, Wo) NCHW output tile (lane-dense along Wo)
    """
    xp = xp_ref[0]                                        # (Cin, Hp, Wp)
    Cin = xp.shape[0]
    Cout = w_ref.shape[0]

    # ---- conv2d (SAME padding) as a single im2col matmul on the MXU ----
    patches = jnp.concatenate(
        [xp[:, kh:kh + H, kw:kw + W] for kh in range(KH) for kw in range(KW)],
        axis=0).reshape(KH * KW * Cin, H * W)             # (T, H*W)
    conv = jnp.dot(w_ref[...], patches,
                   preferred_element_type=jnp.float32)    # (Cout, H*W)
    conv = (conv + b_ref[...]).reshape(Cout, H, W)

    # ---- bilinear upsample (align_corners=True), per channel ----
    # Row upsample restricted to this output-row tile, then column upsample.
    # Both matmuls keep the output minor dim on W/Wo -> lane-dense stores.
    ah = ah_ref[...]                                      # (THO, H)
    awt = awt_ref[...]                                    # (W, Wo)
    for c in range(Cout):                                 # Cout is tiny & static
        t = jnp.dot(ah, conv[c], preferred_element_type=jnp.float32)     # (THO, W)
        out_ref[0, c] = jnp.dot(
            t, awt, preferred_element_type=jnp.float32).astype(out_ref.dtype)


def _bilinear_matrix(n_in, n_out):
    """Interpolation matrix A (n_out, n_in): out = A @ in, align_corners=True."""
    A = np.zeros((n_out, n_in), dtype=np.float32)
    if n_in == 1:
        A[:, 0] = 1.0
        return jnp.asarray(A)
    src = np.arange(n_out, dtype=np.float64) * (n_in - 1) / (n_out - 1)
    lo = np.clip(np.floor(src).astype(np.int64), 0, n_in - 2)
    frac = (src - lo).astype(np.float32)
    rows = np.arange(n_out)
    A[rows, lo] += 1.0 - frac
    A[rows, lo + 1] += frac
    return jnp.asarray(A)


def _pick_row_tile(Ho):
    """Largest multiple-of-8 divisor of Ho that is <= min(Ho//2, 256) (fallback Ho)."""
    if Ho % 8 != 0:
        return Ho
    cap = max(8, min(Ho // 2, 256))
    best = Ho
    for t in range(8, cap + 1, 8):
        if Ho % t == 0:
            best = t
    return best


def segmentation_head(x_nchw, weight, bias, upsampling=4):
    """x_nchw: (B, Cin, H, W); weight: (Cout, Cin, KH, KW); bias: (Cout,). Returns NCHW."""
    B, Cin, H, W = x_nchw.shape
    Cout, _, KH, KW = weight.shape
    pad = KH // 2
    scale = upsampling if upsampling > 1 else 1
    Ho, Wo = H * scale, W * scale
    Hp, Wp = H + 2 * pad, W + 2 * pad
    T = KH * KW * Cin

    # glue (no transposes of the activations): zero-pad in NCHW, im2col the weights,
    # build the interpolation matrices.
    xp = jnp.pad(x_nchw, ((0, 0), (0, 0), (pad, pad), (pad, pad)))
    w2d = jnp.transpose(weight, (0, 2, 3, 1)).reshape(Cout, T)   # (Cout, KH*KW*Cin)
    b2 = bias.reshape(Cout, 1)
    ah = _bilinear_matrix(H, Ho)                                 # (Ho, H)
    awt = _bilinear_matrix(W, Wo).T                              # (W, Wo)

    THO = _pick_row_tile(Ho)
    R = Ho // THO

    itemsize = jnp.dtype(x_nchw.dtype).itemsize
    block_elems = (Cin * Hp * Wp + Cout * T + Cout + THO * H + W * Wo
                   + Cout * THO * Wo)
    vmem_limit = int(min(64 * 2**20, max(16 * 2**20, 6 * block_elems * itemsize)))

    kernel = functools.partial(_seg_head_kernel, KH=KH, KW=KW, H=H, W=W)
    out = pl.pallas_call(
        kernel,
        out_shape=jax.ShapeDtypeStruct((B, Cout, Ho, Wo), x_nchw.dtype),
        grid=(B, R),
        in_specs=[
            pl.BlockSpec((1, Cin, Hp, Wp), lambda b, r: (b, 0, 0, 0)),  # resident per b
            pl.BlockSpec((Cout, T), lambda b, r: (0, 0)),
            pl.BlockSpec((Cout, 1), lambda b, r: (0, 0)),
            pl.BlockSpec((THO, H), lambda b, r: (r, 0)),
            pl.BlockSpec((W, Wo), lambda b, r: (0, 0)),
        ],
        out_specs=pl.BlockSpec((1, Cout, THO, Wo), lambda b, r: (b, 0, r, 0)),
        compiler_params=pltpu.CompilerParams(
            dimension_semantics=("parallel", "parallel"),
            vmem_limit_bytes=vmem_limit),
    )(xp, w2d, b2, ah, awt)

    return out                                                   # already NCHW


def _reference(x_nchw, weight, bias, upsampling=4):
    """Pure-JAX reference (conv + matrix bilinear upsample), NCHW."""
    pad = weight.shape[2] // 2
    conv = lax.conv_general_dilated(
        x_nchw, weight, window_strides=(1, 1),
        padding=((pad, pad), (pad, pad)),
        dimension_numbers=('NCHW', 'OIHW', 'NCHW'))
    conv = conv + bias[None, :, None, None]
    H, W = conv.shape[2], conv.shape[3]
    ah = _bilinear_matrix(H, H * upsampling)
    aw = _bilinear_matrix(W, W * upsampling)
    up = jnp.einsum('oh,bchw->bcow', ah, conv)
    up = jnp.einsum('pw,bcow->bcop', aw, up)
    return up


if __name__ == "__main__":
    # small shapes consistent with the module
    B, Cin, Cout, H, W = 2, 4, 3, 16, 16
    upsampling = 4

    key = jax.random.PRNGKey(0)
    kx, kw, kb = jax.random.split(key, 3)
    x = jax.random.normal(kx, (B, Cin, H, W), dtype=jnp.float32)
    # deterministic synthetic parameters (nn.Conv2d shapes)
    fan_in = Cin * 3 * 3
    bound = 1.0 / np.sqrt(fan_in)
    weight = jax.random.uniform(kw, (Cout, Cin, 3, 3), minval=-bound, maxval=bound,
                                dtype=jnp.float32)
    bias = jax.random.uniform(kb, (Cout,), minval=-bound, maxval=bound,
                              dtype=jnp.float32)

    out = segmentation_head(x, weight, bias, upsampling=upsampling)
    out = jax.block_until_ready(out)
    assert out.shape == (B, Cout, H * upsampling, W * upsampling), out.shape

    ref = jax.block_until_ready(_reference(x, weight, bias, upsampling=upsampling))
    np.testing.assert_allclose(np.asarray(out), np.asarray(ref), rtol=1e-3, atol=1e-3)

    print("KERNEL_OK")
</pallas_src>

<mosaic_0001>
module attributes {stable_mosaic.version = 11 : i64} {
  func.func @_seg_head_kernel(%arg0: i32, %arg1: i32, %arg2: memref<1x4x18x18xf32, #tpu.memory_space<vmem>>, %arg3: memref<3x36xf32, #tpu.memory_space<vmem>>, %arg4: memref<3x1xf32, #tpu.memory_space<vmem>>, %arg5: memref<32x16xf32, #tpu.memory_space<vmem>>, %arg6: memref<16x64xf32, #tpu.memory_space<vmem>>, %arg7: memref<1x3x32x64xf32, #tpu.memory_space<vmem>>) attributes {dimension_semantics = [#tpu.dimension_semantics<parallel>, #tpu.dimension_semantics<parallel>], iteration_bounds = array<i64: 2, 2>, scalar_prefetch = 0 : i64, scratch_operands = 0 : i64, tpu.core_type = #tpu.core_type<tc>, window_params = [{transform_indices = @transform_0, window_bounds = array<i64: 1, 4, 18, 18>}, {pipeline_mode = #tpu.pipeline_mode<synchronous>, transform_indices = @transform_1, window_bounds = array<i64: 3, 36>}, {pipeline_mode = #tpu.pipeline_mode<synchronous>, transform_indices = @transform_2, window_bounds = array<i64: 3, 1>}, {transform_indices = @transform_3, window_bounds = array<i64: 32, 16>}, {pipeline_mode = #tpu.pipeline_mode<synchronous>, transform_indices = @transform_4, window_bounds = array<i64: 16, 64>}, {transform_indices = @transform_5, window_bounds = array<i64: 1, 3, 32, 64>}]} {
    %c0 = arith.constant 0 : index
    %c0_0 = arith.constant 0 : index
    %c0_1 = arith.constant 0 : index
    %c0_2 = arith.constant 0 : index
    %0 = vector.load %arg2[%c0, %c0_0, %c0_1, %c0_2] : memref<1x4x18x18xf32, #tpu.memory_space<vmem>>, vector<1x4x18x18xf32>
    %1 = vector.shape_cast %0 : vector<1x4x18x18xf32> to vector<4x18x18xf32>
    %2 = vector.extract_strided_slice %1 {offsets = [0, 0, 0], sizes = [4, 16, 16], strides = [1, 1, 1]} : vector<4x18x18xf32> to vector<4x16x16xf32>
    %3 = vector.extract_strided_slice %1 {offsets = [0, 0, 1], sizes = [4, 16, 16], strides = [1, 1, 1]} : vector<4x18x18xf32> to vector<4x16x16xf32>
    %4 = vector.extract_strided_slice %1 {offsets = [0, 0, 2], sizes = [4, 16, 16], strides = [1, 1, 1]} : vector<4x18x18xf32> to vector<4x16x16xf32>
    %5 = vector.extract_strided_slice %1 {offsets = [0, 1, 0], sizes = [4, 16, 16], strides = [1, 1, 1]} : vector<4x18x18xf32> to vector<4x16x16xf32>
    %6 = vector.extract_strided_slice %1 {offsets = [0, 1, 1], sizes = [4, 16, 16], strides = [1, 1, 1]} : vector<4x18x18xf32> to vector<4x16x16xf32>
    %7 = vector.extract_strided_slice %1 {offsets = [0, 1, 2], sizes = [4, 16, 16], strides = [1, 1, 1]} : vector<4x18x18xf32> to vector<4x16x16xf32>
    %8 = vector.extract_strided_slice %1 {offsets = [0, 2, 0], sizes = [4, 16, 16], strides = [1, 1, 1]} : vector<4x18x18xf32> to vector<4x16x16xf32>
    %9 = vector.extract_strided_slice %1 {offsets = [0, 2, 1], sizes = [4, 16, 16], strides = [1, 1, 1]} : vector<4x18x18xf32> to vector<4x16x16xf32>
    %10 = vector.extract_strided_slice %1 {offsets = [0, 2, 2], sizes = [4, 16, 16], strides = [1, 1, 1]} : vector<4x18x18xf32> to vector<4x16x16xf32>
    %11 = tpu.concatenate %2, %3, %4, %5, %6, %7, %8, %9, %10 in 0 : vector<4x16x16xf32>, vector<4x16x16xf32>, vector<4x16x16xf32>, vector<4x16x16xf32>, vector<4x16x16xf32>, vector<4x16x16xf32>, vector<4x16x16xf32>, vector<4x16x16xf32>, vector<4x16x16xf32> -> vector<36x16x16xf32>
    %12 = vector.shape_cast %11 : vector<36x16x16xf32> to vector<36x256xf32>
    %c0_3 = arith.constant 0 : index
    %c0_4 = arith.constant 0 : index
    %13 = vector.load %arg3[%c0_3, %c0_4] : memref<3x36xf32, #tpu.memory_space<vmem>>, vector<3x36xf32>
    %cst = arith.constant dense<0.000000e+00> : vector<3x256xf32>
    %14 = tpu.matmul %13, %12, %cst {dimension_numbers = #tpu.dot_dimension_numbers<[1], [0], [0], [1], [0, 0, 1, 1], [], []>} : vector<3x36xf32>, vector<36x256xf32>, vector<3x256xf32> -> vector<3x256xf32>
    %c0_5 = arith.constant 0 : index
    %c0_6 = arith.constant 0 : index
    %15 = vector.load %arg4[%c0_5, %c0_6] : memref<3x1xf32, #tpu.memory_space<vmem>>, vector<3x1xf32>
    %16 = vector.broadcast %15 : vector<3x1xf32> to vector<3x256xf32>
    %17 = arith.addf %14, %16 : vector<3x256xf32>
    %18 = vector.shape_cast %17 : vector<3x256xf32> to vector<3x16x16xf32>
    %c0_7 = arith.constant 0 : index
    %c0_8 = arith.constant 0 : index
    %19 = vector.load %arg5[%c0_7, %c0_8] : memref<32x16xf32, #tpu.memory_space<vmem>>, vector<32x16xf32>
    %c0_9 = arith.constant 0 : index
    %c0_10 = arith.constant 0 : index
    %20 = vector.load %arg6[%c0_9, %c0_10] : memref<16x64xf32, #tpu.memory_space<vmem>>, vector<16x64xf32>
    %21 = vector.extract_strided_slice %18 {offsets = [0, 0, 0], sizes = [1, 16, 16], strides = [1, 1, 1]} : vector<3x16x16xf32> to vector<1x16x16xf32>
    %22 = vector.shape_cast %21 : vector<1x16x16xf32> to vector<16x16xf32>
    %cst_11 = arith.constant dense<0.000000e+00> : vector<32x16xf32>
    %23 = tpu.matmul %19, %22, %cst_11 {dimension_numbers = #tpu.dot_dimension_numbers<[1], [0], [0], [1], [0, 0, 1, 1], [], []>} : vector<32x16xf32>, vector<16x16xf32>, vector<32x16xf32> -> vector<32x16xf32>
    %cst_12 = arith.constant dense<0.000000e+00> : vector<32x64xf32>
    %24 = tpu.matmul %23, %20, %cst_12 {dimension_numbers = #tpu.dot_dimension_numbers<[1], [0], [0], [1], [0, 0, 1, 1], [], []>} : vector<32x16xf32>, vector<16x64xf32>, vector<32x64xf32> -> vector<32x64xf32>
    %c0_13 = arith.constant 0 : index
    %c0_14 = arith.constant 0 : index
    %c0_15 = arith.constant 0 : index
    %c0_16 = arith.constant 0 : index
    %25 = vector.load %arg7[%c0_13, %c0_14, %c0_15, %c0_16] : memref<1x3x32x64xf32, #tpu.memory_space<vmem>>, vector<1x1x32x64xf32>
    %26 = vector.shape_cast %25 : vector<1x1x32x64xf32> to vector<32x64xf32>
    %27 = vector.shape_cast %24 : vector<32x64xf32> to vector<1x1x32x64xf32>
    tpu.vector_store %arg7[%c0_13, %c0_14, %c0_15, %c0_16], %27 {strides = array<i32>} : memref<1x3x32x64xf32, #tpu.memory_space<vmem>>, vector<1x1x32x64xf32>,
    %28 = vector.extract_strided_slice %18 {offsets = [1, 0, 0], sizes = [1, 16, 16], strides = [1, 1, 1]} : vector<3x16x16xf32> to vector<1x16x16xf32>
    %29 = vector.shape_cast %28 : vector<1x16x16xf32> to vector<16x16xf32>
    %cst_17 = arith.constant dense<0.000000e+00> : vector<32x16xf32>
    %30 = tpu.matmul %19, %29, %cst_17 {dimension_numbers = #tpu.dot_dimension_numbers<[1], [0], [0], [1], [0, 0, 1, 1], [], []>} : vector<32x16xf32>, vector<16x16xf32>, vector<32x16xf32> -> vector<32x16xf32>
    %cst_18 = arith.constant dense<0.000000e+00> : vector<32x64xf32>
    %31 = tpu.matmul %30, %20, %cst_18 {dimension_numbers = #tpu.dot_dimension_numbers<[1], [0], [0], [1], [0, 0, 1, 1], [], []>} : vector<32x16xf32>, vector<16x64xf32>, vector<32x64xf32> -> vector<32x64xf32>
    %c0_19 = arith.constant 0 : index
    %c1 = arith.constant 1 : index
    %c0_20 = arith.constant 0 : index
    %c0_21 = arith.constant 0 : index
    %32 = vector.load %arg7[%c0_19, %c1, %c0_20, %c0_21] : memref<1x3x32x64xf32, #tpu.memory_space<vmem>>, vector<1x1x32x64xf32>
    %33 = vector.shape_cast %32 : vector<1x1x32x64xf32> to vector<32x64xf32>
    %34 = vector.shape_cast %31 : vector<32x64xf32> to vector<1x1x32x64xf32>
    tpu.vector_store %arg7[%c0_19, %c1, %c0_20, %c0_21], %34 {strides = array<i32>} : memref<1x3x32x64xf32, #tpu.memory_space<vmem>>, vector<1x1x32x64xf32>,
    %35 = vector.extract_strided_slice %18 {offsets = [2, 0, 0], sizes = [1, 16, 16], strides = [1, 1, 1]} : vector<3x16x16xf32> to vector<1x16x16xf32>
    %36 = vector.shape_cast %35 : vector<1x16x16xf32> to vector<16x16xf32>
    %cst_22 = arith.constant dense<0.000000e+00> : vector<32x16xf32>
    %37 = tpu.matmul %19, %36, %cst_22 {dimension_numbers = #tpu.dot_dimension_numbers<[1], [0], [0], [1], [0, 0, 1, 1], [], []>} : vector<32x16xf32>, vector<16x16xf32>, vector<32x16xf32> -> vector<32x16xf32>
    %cst_23 = arith.constant dense<0.000000e+00> : vector<32x64xf32>
    %38 = tpu.matmul %37, %20, %cst_23 {dimension_numbers = #tpu.dot_dimension_numbers<[1], [0], [0], [1], [0, 0, 1, 1], [], []>} : vector<32x16xf32>, vector<16x64xf32>, vector<32x64xf32> -> vector<32x64xf32>
    %c0_24 = arith.constant 0 : index
    %c2 = arith.constant 2 : index
    %c0_25 = arith.constant 0 : index
    %c0_26 = arith.constant 0 : index
    %39 = vector.load %arg7[%c0_24, %c2, %c0_25, %c0_26] : memref<1x3x32x64xf32, #tpu.memory_space<vmem>>, vector<1x1x32x64xf32>
    %40 = vector.shape_cast %39 : vector<1x1x32x64xf32> to vector<32x64xf32>
    %41 = vector.shape_cast %38 : vector<32x64xf32> to vector<1x1x32x64xf32>
    tpu.vector_store %arg7[%c0_24, %c2, %c0_25, %c0_26], %41 {strides = array<i32>} : memref<1x3x32x64xf32, #tpu.memory_space<vmem>>, vector<1x1x32x64xf32>,
    return
  }
  func.func @transform_0(%arg0: i32, %arg1: i32) -> (i32, i32, i32, i32) {
    %c0_i32 = arith.constant 0 : i32
    %c0_i32_0 = arith.constant 0 : i32
    %c0_i32_1 = arith.constant 0 : i32
    %c0_i32_2 = arith.constant 0 : i32
    return %arg0, %c0_i32, %c0_i32_0, %c0_i32_1 : i32, i32, i32, i32
  }
  func.func @transform_1(%arg0: i32, %arg1: i32) -> (i32, i32) {
    %c0_i32 = arith.constant 0 : i32
    %c0_i32_0 = arith.constant 0 : i32
    %c0_i32_1 = arith.constant 0 : i32
    return %c0_i32, %c0_i32_0 : i32, i32
  }
  func.func @transform_2(%arg0: i32, %arg1: i32) -> (i32, i32) {
    %c0_i32 = arith.constant 0 : i32
    %c0_i32_0 = arith.constant 0 : i32
    %c0_i32_1 = arith.constant 0 : i32
    return %c0_i32, %c0_i32_0 : i32, i32
  }
  func.func @transform_3(%arg0: i32, %arg1: i32) -> (i32, i32) {
    %c0_i32 = arith.constant 0 : i32
    %c0_i32_0 = arith.constant 0 : i32
    return %arg1, %c0_i32 : i32, i32
  }
  func.func @transform_4(%arg0: i32, %arg1: i32) -> (i32, i32) {
    %c0_i32 = arith.constant 0 : i32
    %c0_i32_0 = arith.constant 0 : i32
    %c0_i32_1 = arith.constant 0 : i32
    return %c0_i32, %c0_i32_0 : i32, i32
  }
  func.func @transform_5(%arg0: i32, %arg1: i32) -> (i32, i32, i32, i32) {
    %c0_i32 = arith.constant 0 : i32
    %c0_i32_0 = arith.constant 0 : i32
    %c0_i32_1 = arith.constant 0 : i32
    return %arg0, %c0_i32, %arg1, %c0_i32_0 : i32, i32, i32, i32
  }
}

</mosaic_0001>

<bundles_post_ra>
// kernel: tpu_custom_call.1
= control target key start
LH: loop header
LB: loop body
LE: loop exit
PB: predicated region body
PF: predicated region fallthrough
CT: control target
= control target key end

     0   :  { %10 = vsyncpa [#allocation3], 0  ;;  %s4731_s0 = inlined_call_operand.vmem [shape: f32[2,4,18,18], index: 0, kind: input, shape index: {}]   ;;  %s4732_s1 = inlined_call_operand.vmem [shape: f32[3,36], index: 1, kind: input, shape index: {}]   ;;  %s4733_s2 = inlined_call_operand.vmem [shape: f32[3,1], index: 2, kind: input, shape index: {}]   ;;  %s4734_s3 = inlined_call_operand.vmem [shape: f32[64,16], index: 3, kind: input, shape index: {}]   ;;  %s4735_s4 = inlined_call_operand.vmem [shape: f32[16,64], index: 4, kind: input, shape index: {}]   ;;  %s4736_s5 = inlined_call_operand.hbm [shape: f32[2,3,64,64], index: 5, kind: output, shape index: {}]  }
   0x1   :  { %12 = vsyncpa [#allocation3 + $0x1], 0  ;;  %s2986_s18 = smov 0   ;;  %s2988_s19 = smov 0  }
   0x2   :  { %s2990_s20 = smov 0   ;;  %s2992_s21 = smov 0  }
   0x3   :  { %s2994_s22 = smov 0   ;;  %s2996_s23 = smov 0  }
   0x4   :  { %s2998_s24 = smov 0   ;;  %s3000_s25 = smov 0  }
   0x5 LB: > { %s2433_s26 = sadd.s32 4294967295, %s2935_s25   ;;  %s2434_s27 = sadd.s32 4294967294, %s2935_s25   ;;  %s2935_s25 = sphi %s3000_s25, %s18_s25   ;;  %s2931_s24 = sphi %s2998_s24, %s4933_s24   ;;  %s2927_s23 = sphi %s2996_s23, %s4932_s23   ;;  %s2923_s22 = sphi %s2994_s22, %s4931_s22   ;;  %s2919_s21 = sphi %s2992_s21, %s4930_s21   ;;  %s2915_s20 = sphi %s2990_s20, %s4929_s20   ;;  %s2911_s19 = sphi %s2988_s19, %s4928_s19   ;;  %s2907_s18 = sphi %s2986_s18, %s4927_s18  }
   0x6   : > { %s27_s28 = sadd.s32 1, %s2927_s23  ;;  %s30_s29 = sadd.s32 1, %s2931_s24 }
   0x7   : > { %p28_p0 = scmp.ge.s32.totalorder %s27_s28, 2  ;;  %p164_p1 = scmp.ne.s32.totalorder %s2915_s20, %s2911_s19 }
   0x8   : > { %p165_p2 = scmp.eq.s32.totalorder %s2433_s26, 3  ;;  %p170_p5 = scmp.ne.s32.totalorder %s2911_s19, %s2907_s18 }
   0x9   : > { %s4935_s28 = smov (%p28_p0, %s27_s28), 0  ;;  %s4937_s29 = smov (!%p28_p0, %s30_s29), %s2931_s24 }
   0xa   : > { %s150_s30 = ssub.s32 %s2927_s23, %s4935_s28  ;;  %p3037_p3 = por %p165_p2, %p164_p1 }
   0xb   : > { %p32_p4 = scmp.ge.s32.totalorder %s4937_s29, 2  ;;  %p171_p6 = scmp.eq.s32.totalorder %s2434_s27, 3 }
   0xc   : > { %p2437_p7 = scmp.ge.s32.totalorder %s2935_s25, 1  ;;  %p215_p9 = scmp.lt.s32.totalorder %s2935_s25, 5 }
   0xd   : > { %s4939_s29 = smov (%p32_p4, %s4937_s29), 0  ;;  %p3046_p8 = por %p171_p6, %p170_p5 }
   0xe   : > { %s149_s8 = ssub.s32 %s2931_s24, %s4939_s29  ;;  %s154_s9 = sadd.s32 1, %s2915_s20 }
   0xf   : > { %s151_s10 = sor.u32 %s150_s30, %s149_s8  ;;  %p216_p10 = pnand %p2437_p7, %p215_p9 }
  0x10   : > { %p152_p11 = scmp.eq.s32.totalorder %s151_s10, 0 }
  0x11   : > { %219 = sbr.rel (%p216_p10) target bundleno = 1046 (0x416), region = 40 }
  0x12   : > { %s3055_s11 = scalar_select %p152_p11, %s2915_s20, %s154_s9  }
  0x16   : > { %p248_p12 = scmp.lt.s32.totalorder %s2923_s22, 1  ;;  %vm409_vm0 = vcmask 1045504   ;;  %vm332_vm1 = vcmask 1046528   ;;  %s2937_s17 = smov 126   ;;  %vm487_vm2 = vcmask 1047556   ;;  %vm1775_vm3 = vcmask 130048  }
  0x17   : > { %s2938_s26 = smov 127   ;;  %s2941_s27 = smov 32   ;;  %vm1781_vm4 = vcmask 261120   ;;  %vm1787_vm5 = vcmask 392192   ;;  %vm1793_vm6 = vcmask 523264   ;;  %vm1799_vm7 = vcmask 654336  }
  0x18   : > { %s249_s12 = scalar_select %p248_p12, %s2923_s22, 1  ;;  %vm1805_vm8 = vcmask 785408   ;;  %vm1811_vm9 = vcmask 916480   ;;  %vm1863_vm10 = vcmask 1043456   ;;  %vm1859_vm11 = vcmask 293888  }
  0x19   : > { %s2942_s30 = smov 64   ;;  %s2943_s8 = smov 96  }
  0x1a   : > { %s2486_s13 = smul.u32 96, %s249_s12  ;;  %s2944_s9 = smov 16  }
  0x1b   : > { %s2945_s10 = smov 48   ;;  %s2946_s12 = smov 80  }
  0x1c   : > { %s3062_s16 = scalar_lea.vmem %s4731_s0, %s2486_s13  ;;  %s2947_s13 = smov 112  }
  0x1d   : > { %v3065_v0 = vld [vmem:[%s3062_s16 + $0x50] sm:$0xff]  ;;  %v271_v1 = vld [vmem:[%s3062_s16 + $0x58] sm:$0x3]  ;;  %v268_v5 = vld [vmem:[%s3062_s16 + $0x40] sm:$0x3]  ;;  %s245_s15 = sand.u32 1, %s2911_s19  }
  0x1e   : > { %v3069_v2 = vld [vmem:[%s3062_s16 + $0x38] sm:$0xff]  ;;  %v426_v3 = vrot.slane %v3065_v0, 2  ;;  %v428_v4 = vrot.slane %v271_v1, 2  ;;  %v3075_v7 = vld [vmem:[%s3062_s16 + $0x8] sm:$0xff]  ;;  %v423_v8 = vrot.slane %v268_v5, 2  ;;  %v349_v11 = vrot.slane %v3065_v0, 1 }
  0x1f   : > { %v421_v6 = vrot.slane %v3069_v2, 2  ;;  %v262_v9 = vld [vmem:[%s3062_s16 + $0x10] sm:$0x3]  ;;  %v411_v10 = vrot.slane %v3075_v7, 2  ;;  %v351_v14 = vrot.slane %v271_v1, 1  ;;  %v3082_v15 = vld [vmem:[%s3062_s16 + $0x48] sm:$0xff] }
  0x20   : > { %v429_v12 = vsel %vm409_vm0, %v426_v3, %v428_v4  ;;  %v413_v13 = vrot.slane %v262_v9, 2  ;;  %v3085_v16 = vld [vmem:[%s3062_s16 + $0x20] sm:$0xff]  ;;  %v425_v18 = vrot.slane %v3082_v15, 2  ;;  %v265_v19 = vld [vmem:[%s3062_s16 + $0x28] sm:$0x3]  ;;  %v3100_v24 = vld [vmem:[%s3062_s16 + $0x18] sm:$0xff] }
  0x21   : > { %476 = vrot.lane.b32.xlu0 %v429_v12, %s2937_s17  ;;  %v424_v17 = vsel %vm409_vm0, %v421_v6, %v423_v8  ;;  %v3096_v22 = vsel %vm332_vm1, %v349_v11, %v351_v14  ;;  %v416_v23 = vrot.slane %v3085_v16, 2  ;;  %v1339_v25 = vrot.slane %v429_v12, 4  ;;  %v3116_v34 = vld [vmem:[%s3062_s16 + $0x30] sm:$0xff]  ;;  %v3139_v47 = vld [vmem:[%s3062_s16] sm:$0xff] }
  0x22   : > { %472 = vrot.lane.b32.xlu1 %v424_v17, %s2937_s17  ;;  %v414_v20 = vsel %vm409_vm0, %v411_v10, %v413_v13  ;;  %v1327_v21 = vrot.slane %v424_v17, 4  ;;  %4791 = vst [vmem:[#allocation7_spill] sm:$0xff] %v3096_v22  ;;  %v2584_v27 = vpack.i.bf16 %v3096_v22, %v424_v17  ;;  %v3104_v28 = vsel %vm409_vm0, %v425_v18, %v426_v3 }
  0x23   : > { %v1329_v26 = vrot.slane %v414_v20, 4  ;;  %v835_v30 = vrot.slane %v3104_v28, 4  ;;  %v418_v31 = vrot.slane %v265_v19, 2  ;;  %v415_v33 = vrot.slane %v3100_v24, 2  ;;  %4792 = vst [vmem:[#allocation8_spill] sm:$0xff] %v3116_v34 }
  0x24   : > { %v3107_v29 = vsel %vm487_vm2, %v1327_v21, %v414_v20  ;;  %2585 = vrot.lane.b32.xlu2 %v2584_v27, %s2938_s26  ;;  %v346_v36 = vrot.slane %v268_v5, 1  ;;  %v420_v42 = vrot.slane %v3116_v34, 2  ;;  %v344_v43 = vrot.slane %v3069_v2, 1  ;;  %4793 = vst [vmem:[#allocation9_spill] sm:$0xff] %v3139_v47 }
  0x25   : > { %v3111_v32 = vsel %vm487_vm2, %v424_v17, %v1329_v26  ;;  %v419_v35 = vsel %vm409_vm0, %v416_v23, %v418_v31  ;;  %v417_v39 = vsel %vm409_vm0, %v415_v33, %v416_v23  ;;  %v2589_v45 = vpack.i.bf16 %v414_v20, %v429_v12 }
  0x26   : > { %v3120_v37 = vsel %vm487_vm2, %v1339_v25, %v419_v35  ;;  %v1341_v38 = vrot.slane %v419_v35, 4  ;;  %v3124_v40 = vsel %vm487_vm2, %v835_v30, %v417_v39  ;;  %v837_v41 = vrot.slane %v417_v39, 4 }
  0x27   : > { %v422_v48 = vsel %vm409_vm0, %v420_v42, %v421_v6  ;;  %v347_v49 = vsel %vm332_vm1, %v344_v43, %v346_v36  ;;  %v334_v50 = vrot.slane %v3075_v7, 1  ;;  %v336_v53 = vrot.slane %v262_v9, 1 }
  0x28   : > { %v3130_v44 = vsel %vm487_vm2, %v429_v12, %v1341_v38  ;;  %v3136_v46 = vsel %vm487_vm2, %v3104_v28, %v837_v41  ;;  %v823_v51 = vrot.slane %v422_v48, 4  ;;  %v1127_v52 = vrot.slane %v347_v49, 4 }
  0x29   : > { %468 = vrot.lane.b32.xlu0 %v419_v35, %s2937_s17  ;;  %v410_v54 = vrot.slane %v3139_v47, 2  ;;  %v337_v55 = vsel %vm332_vm1, %v334_v50, %v336_v53  ;;  %v343_v60 = vrot.slane %v3116_v34, 1  ;;  %v341_v61 = vrot.slane %v265_v19, 1 }
  0x2a   : > { %474 = vrot.lane.b32.xlu1 %v3104_v28, %s2937_s17  ;;  %v3150_v57 = vsel %vm487_vm2, %v1127_v52, %v337_v55  ;;  %v1129_v58 = vrot.slane %v337_v55, 4  ;;  %v339_v62 = vrot.slane %v3085_v16, 1  ;;  %v2599_v4 = vpack.i.bf16 %v422_v48, %v419_v35 }
  0x2b   : > { %v412_v56 = vsel %vm409_vm0, %v410_v54, %v411_v10  ;;  %v2594_v5 = vpack.i.bf16 %v3065_v0, %v347_v49  ;;  %v345_v6 = vsel %vm332_vm1, %v343_v60, %v344_v43  ;;  %v348_v9 = vrot.slane %v3082_v15, 1 }
  0x2c   : > { %2590 = vrot.lane.b32.xlu2 %v2589_v45, %s2938_s26  ;;  %v3153_v59 = vsel %vm487_vm2, %v823_v51, %v412_v56  ;;  %v825_v63 = vrot.slane %v412_v56, 4  ;;  %v3159_v1 = vsel %vm487_vm2, %v347_v49, %v1129_v58  ;;  %v3168_v8 = vsel %vm332_vm1, %v339_v62, %v341_v61 }
  0x2d   : > { %4794 = vst [vmem:[#allocation10_spill] sm:$0xff] %v3159_v1  ;;  %v623_v10 = vrot.slane %v345_v6, 4  ;;  %v333_v12 = vrot.slane %v3139_v47, 1  ;;  %v2604_v13 = vpack.i.bf16 %v347_v49, %v3168_v8  ;;  %v3179_v17 = vsel %vm332_vm1, %v348_v9, %v349_v11 }
  0x2e   : > { %v3162_v3 = vsel %vm487_vm2, %v422_v48, %v825_v63  ;;  %4795 = vst [vmem:[#allocation11_spill] sm:$0xff] %v3168_v8  ;;  %v2609_v21 = vpack.i.bf16 %v3104_v28, %v3179_v17  ;;  %v2614_v23 = vpack.i.bf16 %v337_v55, %v3096_v22  ;;  %v2619_v11 = vpack.i.bf16 %v345_v6, %v3168_v8 }
  0x2f   : > { %v335_v14 = vsel %vm332_vm1, %v333_v12, %v334_v50  ;;  %4796 = vst [vmem:[#allocation12_spill] sm:$0xff] %v3179_v17  ;;  %v2624_v25 = vpack.i.bf16 %v417_v39, %v412_v56  ;;  %v338_v26 = vrot.slane %v3100_v24, 1  ;;  %v2629_v27 = vpack.i.bf16 %v3069_v2, %v3085_v16 }
  0x30   : > { %v3182_v18 = vsel %vm487_vm2, %v623_v10, %v335_v14  ;;  %v625_v19 = vrot.slane %v335_v14, 4  ;;  %v2634_v30 = vpack.i.bf16 %v3179_v17, %v3082_v15  ;;  %v2644_v33 = vpack.i.bf16 %v3069_v2, %v345_v6 }
  0x31   : > { %464 = vrot.lane.b32.xlu0 %v414_v20, %s2937_s17  ;;  %v3201_v28 = vsel %vm332_vm1, %v338_v26, %v339_v62  ;;  %v2654_v36 = vpack.i.bf16 %v335_v14, %v3065_v0  ;;  %v2659_v38 = vpack.i.bf16 %v3100_v24, %v3075_v7  ;;  %v2664_v2 = vpack.i.bf16 %v3139_v47, %v3116_v34 }
  0x32   : > { %466 = vrot.lane.b32.xlu1 %v417_v39, %s2937_s17  ;;  %v3185_v20 = vsel %vm487_vm2, %v345_v6, %v625_v19  ;;  %4798 = vst [vmem:[#allocation14_spill] sm:$0xff] %v3201_v28  ;;  %v2639_v31 = vpack.i.bf16 %v3201_v28, %v337_v55  ;;  %v2649_v35 = vpack.i.bf16 %v3201_v28, %v335_v14  ;;  %v2939_v45 = vmov 1983009808  }
  0x33   : > { %4797 = vst [vmem:[#allocation13_spill] sm:$0xff] %v3185_v20  ;;  %v2669_v39 = vpack.i.bf16 %v3085_v16, %v3075_v7  ;;  %v2674_v0 = vpack.i.bf16 %v3082_v15, %v3116_v34  ;;  %v2679_v41 = vpack.i.bf16 %v3100_v24, %v3139_v47  ;;  %v492_v7 = vunpack.c.l.s4 %v2939_v45 }
  0x34   : > { %470 = vrot.lane.b32.xlu2 %v422_v48, %s2937_s17  ;;  %v635_v26 = vrot.slane %v3179_v17, 4 }
  0x35   : > { %v3234_v16 = vunpack.c.0.s8 %v492_v7 }
  0x37   : > { %4799 = vst [vmem:[#allocation15_spill] sm:$0xff] %v3234_v16  ;;  %v1346_v15 = vperm.slane %v3120_v37, %v3234_v16  ;;  %v1334_v51 = vperm.slane %v3107_v29, %v3234_v16  ;;  %v3251_v54 = vperm.slane %v3111_v32, %v3234_v16  ;;  %v1139_v37 = vrot.slane %v3096_v22, 4 }
  0x38   : > { %v3256_v55 = vperm.slane %v3130_v44, %v3234_v16  ;;  %v3264_v61 = vperm.slane %v3136_v46, %v3234_v16 }
  0x39   : > { %2595 = vrot.lane.b32.xlu0 %v2594_v5, %s2937_s17  ;;  %v1375_v49 = vrot.slane %v1346_v15, 4  ;;  %v1140_v44 = vsel %vm487_vm2, %v1139_v37, %v3168_v8  ;;  %v1377_v12 = vrot.slane %v1334_v51, 4 }
  0x3a   : > { %2600 = vrot.lane.b32.xlu1 %v2599_v4, %s2938_s26  ;;  %v3272_v4 = vperm.slane %v3150_v57, %v3234_v16 }
  0x3b   : > { %v3247_v53 = vsel %vm487_vm2, %v1375_v49, %v1334_v51 }
  0x3c   : > { %2605 = vrot.lane.b32.xlu2 %v2604_v13, %s2938_s26 }
  0x41   : > { %2610 = vrot.lane.b32.xlu0 %v2609_v21, %s2938_s26 }
  0x42   : > { %2615 = vrot.lane.b32.xlu1 %v2614_v23, %s2937_s17  ;;  %v2940_v23 = vmov 1934713408  }
  0x44   : > { %462 = vrot.lane.b32.xlu2 %v412_v56, %s2937_s17  ;;  %v842_v56 = vperm.slane %v3124_v40, %v3234_v16  ;;  %v830_v40 = vperm.slane %v3153_v59, %v3234_v16  ;;  %v3286_v59 = vperm.slane %v1140_v44, %v3234_v16 }
  0x46   : > { %v871_v63 = vrot.slane %v842_v56, 4 }
  0x48   : > { %v3304_v37 = vsel %vm487_vm2, %v871_v63, %v830_v40 }
  0x49   : > { %2620 = vrot.lane.b32.xlu0 %v2619_v11, %s2937_s17  ;;  %v540_v11 = vunpack.c.l.s4 %v2940_v23 }
  0x4a   : > { %2625 = vrot.lane.b32.xlu1 %v2624_v25, %s2938_s26  ;;  %v3289_v25 = vsel %vm487_vm2, %v1346_v15, %v1377_v12 }
  0x4b   : > { %v3301_v51 = vunpack.c.0.s8 %v540_v11 }
  0x4c   : > { %2630 = vrot.lane.b32.xlu2 %v2629_v27, %s2937_s17 }
  0x51   : > { %2635 = vrot.lane.b32.xlu0 %v2634_v30, %s2937_s17  ;;  %v873_v30 = vrot.slane %v830_v40, 4 }
  0x52   : > { %2640 = vrot.lane.b32.xlu1 %v2639_v31, %s2938_s26 }
  0x54   : > { %2645 = vrot.lane.b32.xlu2 %v2644_v33, %s2938_s26 }
  0x59   : > { %2650 = vrot.lane.b32.xlu0 %v2649_v35, %s2937_s17 }
  0x5a   : > { %2655 = vrot.lane.b32.xlu1 %v2654_v36, %s2938_s26 }
  0x5c   : > { %2660 = vrot.lane.b32.xlu2 %v2659_v38, %s2937_s17 }
  0x61   : > { %2665 = vrot.lane.b32.xlu0 %v2664_v2, %s2937_s17 }
  0x62   : > { %2670 = vrot.lane.b32.xlu1 %v2669_v39, %s2938_s26 }
  0x64   : > { %2675 = vrot.lane.b32.xlu2 %v2674_v0, %s2938_s26 }
  0x69   : > { %2680 = vrot.lane.b32.xlu0 %v2679_v41, %s2938_s26  ;;  %s4588_s26 = sshll.u32 %s2919_s21, 2 }
  0x6a   : > { %p254_p13 = scmp.lt.s32.totalorder %s4588_s26, 7 }
  0x6c   : > { %s4596_s21 = scalar_select %p254_p13, %s4588_s26, 7 }
  0x7e   : > { %v3230_v42 = vpop.permute.xlu2 %2585 }
  0x7f   : > { %v2587_v5 = vunpack.i.l.bf16 %v3230_v42  ;;  %v2588_v46 = vunpack.i.h.bf16 %v3230_v42 }
  0x81   : > { %v1351_v31 = vrot.slane %v2587_v5, 4  ;;  %v1227_v35 = vrot.slane %v2588_v46, 4 }
  0x86   : > { %v3232_v43 = vpop.permute.xlu2 %2590 }
  0x87   : > { %v2593_v9 = vunpack.i.h.bf16 %v3232_v43 }
  0x89   : > { %v1353_v36 = vrot.slane %v2593_v9, 4 }
  0x8b   : > { %v1354_v12 = vsel %vm487_vm2, %v2587_v5, %v1353_v36  ;;  %v3340_v36 = vperm.slane %v3162_v3, %v3234_v16 }
  0x8e   : > { %v471_v48 = vpop.permute.xlu2 %470 }
  0x8f   : > { %v935_v29 = vrot.slane %v471_v48, 4 }
  0x93   : > { %v3238_v50 = vpop.permute.xlu0 %476 }
  0x94   : > { %v3240_v24 = vpop.permute.xlu1 %472  ;;  %v1451_v15 = vrot.slane %v3238_v50, 4 }
  0x95   : > { %v1439_v49 = vrot.slane %v3240_v24, 4 }
  0x96   : > { %v3244_v52 = vpop.permute.xlu2 %2605 }
  0x97   : > { %v2607_v38 = vunpack.i.l.bf16 %v3244_v52 }
  0x99   : > { %v1228_v3 = vsel %vm487_vm2, %v1227_v35, %v2607_v38  ;;  %v4737_v35 = vunpack.i.h.bf16 %v3244_v52 }
  0x9b   : > { %v3260_v58 = vpop.permute.xlu0 %468 }
  0x9c   : > { %v475_v60 = vpop.permute.xlu1 %474 }
  0x9d   : > { %v947_v14 = vrot.slane %v475_v60, 4 }
  0x9e   : > { %v463_v6 = vpop.permute.xlu2 %462 }
  0x9f   : > { %v936_v10 = vsel %vm487_vm2, %v935_v29, %v463_v6  ;;  %v937_v19 = vrot.slane %v463_v6, 4  ;;  %v1352_v29 = vsel %vm487_vm2, %v1351_v31, %v2593_v9  ;;  %v1453_v9 = vrot.slane %v3260_v58, 4 }
  0xa0   : > { %v3282_v57 = vperm.slane %v936_v10, %v3234_v16 }
  0xa1   : > { %v938_v0 = vsel %vm487_vm2, %v471_v48, %v937_v19 }
  0xa2   : > { %v961_v41 = vrot.slane %v3282_v57, 4  ;;  %v3319_v63 = vperm.slane %v938_v0, %v3234_v16 }
  0xa3   : > { %v465_v33 = vpop.permute.xlu0 %464 }
  0xa4   : > { %v467_v2 = vpop.permute.xlu1 %466  ;;  %v1441_v39 = vrot.slane %v465_v33, 4  ;;  %v1440_v23 = vsel %vm487_vm2, %v1439_v49, %v465_v33  ;;  %v973_v42 = vrot.slane %v3319_v63, 4 }
  0xa5   : > { %v948_v45 = vsel %vm487_vm2, %v947_v14, %v467_v2  ;;  %v949_v7 = vrot.slane %v467_v2, 4  ;;  %v1452_v14 = vsel %vm487_vm2, %v1451_v15, %v3260_v58  ;;  %v636_v58 = vsel %vm487_vm2, %v635_v26, %v3201_v28 }
  0xa6   : > { %v3309_v48 = vperm.slane %v948_v45, %v3234_v16  ;;  %v1442_v6 = vsel %vm487_vm2, %v3240_v24, %v1441_v39  ;;  %v3313_v10 = vpop.permute.xlu2 %2630  ;;  %v3328_v24 = vsel %vm487_vm2, %v842_v56, %v873_v30  ;;  %v3346_v56 = vperm.slane %v3182_v18, %v3234_v16 }
  0xa7   : > { %v950_v44 = vsel %vm487_vm2, %v475_v60, %v949_v7  ;;  %v1229_v60 = vrot.slane %v2607_v38, 4  ;;  %v3333_v11 = vperm.slane %v1442_v6, %v3234_v16  ;;  %v3349_v30 = vperm.slane %v1452_v14, %v3234_v16 }
  0xa8   : > { %v3322_v40 = vperm.slane %v950_v44, %v3234_v16  ;;  %v962_v19 = vsel %vm487_vm2, %v3309_v48, %v961_v41  ;;  %v3354_v2 = vperm.slane %v1352_v29, %v3234_v16  ;;  %v2592_v39 = vunpack.i.l.bf16 %v3232_v43 }
  0xa9   : > { %v3336_v31 = vperm.slane %v962_v19, %v3301_v51  ;;  %v3365_v18 = vperm.slane %v1354_v12, %v3234_v16  ;;  %v1454_v41 = vsel %vm487_vm2, %v3238_v50, %v1453_v9  ;;  %v3370_v45 = vperm.slane %v1440_v23, %v3234_v16 }
  0xaa   : > { %v971_v5 = vrot.slane %v3322_v40, 4  ;;  %v1230_v38 = vsel %vm487_vm2, %v2588_v46, %v1229_v60  ;;  %v1477_v7 = vrot.slane %v3333_v11, 4  ;;  %v3382_v15 = vperm.slane %v3247_v53, %v3301_v51 }
  0xab   : > { %4800 = vst [vmem:[#allocation16_spill] sm:$0xff] %v3336_v31  ;;  %v3351_v33 = vpop.permute.xlu0 %2595  ;;  %1528 = vrot.lane.b32.xlu0 %v3336_v31, %s2941_s27  ;;  %v3385_v50 = vperm.slane %v1228_v3, %v3234_v16  ;;  %v1463_v49 = vrot.slane %v3349_v30, 4  ;;  %v3394_v46 = vperm.slane %v636_v58, %v3234_v16  ;;  %v3397_v53 = vperm.slane %v1454_v41, %v3234_v16 }
  0xac   : > { %v3358_v0 = vpop.permute.xlu1 %2600  ;;  %v972_v26 = vsel %vm487_vm2, %v971_v5, %v3319_v63  ;;  %4802 = vst [vmem:[#allocation18_spill] sm:$0xff] %v3382_v15  ;;  %v2598_v44 = vunpack.i.h.bf16 %v3351_v33  ;;  %v2632_v6 = vunpack.i.l.bf16 %v3313_v10  ;;  %v1363_v60 = vrot.slane %v2592_v39, 4 }
  0xad   : > { %v3373_v43 = vperm.slane %v972_v26, %v3301_v51  ;;  %v2602_v29 = vunpack.i.l.bf16 %v3358_v0  ;;  %v3404_v9 = vperm.slane %v1230_v38, %v3234_v16  ;;  %v1464_v19 = vsel %vm487_vm2, %v1463_v49, %v3370_v45 }
  0xae   : > { %v3400_v12 = vpop.permute.xlu2 %2645  ;;  %v1401_v5 = vrot.slane %v3354_v2, 4  ;;  %v3412_v58 = vrot.slane %v4737_v35, 4  ;;  %v1478_v3 = vsel %vm487_vm2, %v3397_v53, %v1477_v7  ;;  %v1115_v38 = vrot.slane %v2598_v44, 4 }
  0xaf   : > { %4801 = vst [vmem:[#allocation17_spill] sm:$0xff] %v3373_v43  ;;  %1568 = vrot.lane.b32.xlu1 %v3373_v43, %s2942_s30  ;;  %v1364_v41 = vsel %vm487_vm2, %v1363_v60, %v2602_v29  ;;  %v4738_v62 = vunpack.i.h.bf16 %v3313_v10  ;;  %v1117_v13 = vrot.slane %v2632_v6, 4  ;;  %v3426_v32 = vperm.slane %v1464_v19, %v3301_v51 }
  0xb0   : > { %4803 = vst [vmem:[#allocation19_spill] sm:$0xff] %v3400_v12  ;;  %v1365_v27 = vrot.slane %v2602_v29, 4  ;;  %v3430_v60 = vperm.slane %v1478_v3, %v3301_v51  ;;  %v3434_v14 = vperm.slane %v3304_v37, %v3301_v51  ;;  %v1370_v35 = vperm.slane %v1364_v41, %v3234_v16 }
  0xb1   : > { %4804 = vst [vmem:[#allocation20_spill] sm:$0xff] %v3404_v9  ;;  %v3441_v19 = vperm.slane %v3289_v25, %v3301_v51  ;;  %v2597_v3 = vunpack.i.l.bf16 %v3351_v33  ;;  %v1116_v49 = vsel %vm487_vm2, %v1115_v38, %v2632_v6  ;;  %v1103_v37 = vrot.slane %v4738_v62, 4 }
  0xb2   : > { %4805 = vst [vmem:[#allocation21_spill] sm:$0xff] %v3426_v32  ;;  %v1118_v41 = vsel %vm487_vm2, %v2598_v44, %v1117_v13  ;;  %v974_v25 = vsel %vm487_vm2, %v3322_v40, %v973_v42  ;;  %v1487_v63 = vrot.slane %v3426_v32, 4  ;;  %v1366_v7 = vsel %vm487_vm2, %v2592_v39, %v1365_v27 }
  0xb3   : > { %v3418_v21 = vpop.permute.xlu0 %2610  ;;  %4806 = vst [vmem:[#allocation22_spill] sm:$0xff] %v3430_v60  ;;  %v1399_v26 = vrot.slane %v1370_v35, 4  ;;  %v1402_v29 = vsel %vm487_vm2, %v1370_v35, %v1401_v5  ;;  %v3461_v62 = vperm.slane %v1116_v49, %v3234_v16  ;;  %v4809_v40 = vunpack.i.h.bf16 %v3358_v0 }
  0xb4   : > { %v3423_v23 = vpop.permute.xlu1 %2615  ;;  %4807 = vst [vmem:[#allocation23_spill] sm:$0xff] %v3434_v14  ;;  %v3469_v27 = vperm.slane %v1118_v41, %v3234_v16  ;;  %v1239_v39 = vrot.slane %v2597_v3, 4  ;;  %v3474_v38 = vperm.slane %v974_v25, %v3301_v51  ;;  %v3477_v35 = vperm.slane %v1366_v7, %v3234_v16 }
  0xb5   : > { %4808 = vst [vmem:[#allocation24_spill] sm:$0xff] %v3441_v19  ;;  %v2618_v13 = vunpack.i.h.bf16 %v3423_v23  ;;  %v847_v42 = vrot.slane %v4809_v40, 4  ;;  %v2617_v49 = vunpack.i.l.bf16 %v3423_v23  ;;  %v3482_v32 = vsel %vm487_vm2, 0.0, %v1487_v63 }
  0xb6   : > { %v3464_v44 = vpop.permute.xlu2 %2660  ;;  %4810 = vst [vmem:[#allocation25_spill] sm:$0xff] %v3469_v27  ;;  %v4812_v41 = vunpack.i.h.bf16 %v3418_v21  ;;  %v3488_v25 = vperm.slane %v1402_v29, %v3301_v51  ;;  %v1151_v7 = vrot.slane %v3461_v62, 4  ;;  %v4814_v9 = vunpack.i.h.bf16 %v3400_v12 }
  0xb7   : > { %1748 = vrot.lane.b32.xlu1 %v3430_v60, %s2943_s8  ;;  %4811 = vst [vmem:[#allocation26_spill] sm:$0xff] %v3474_v38  ;;  %v2662_v43 = vunpack.i.l.bf16 %v3464_v44  ;;  %v1240_v23 = vsel %vm487_vm2, %v1239_v39, %v2618_v13  ;;  %v1400_v63 = vsel %vm487_vm2, %v1399_v26, %v3354_v2  ;;  %v1241_v22 = vrot.slane %v2618_v13, 4 }
  0xb8   : > { %v859_v40 = vrot.slane %v4812_v41, 4  ;;  %4813 = vst [vmem:[#allocation27_spill] sm:$0xff] %v3488_v25  ;;  %v3493_v5 = vrot.slane %v4814_v9, 4  ;;  %v4815_v29 = vunpack.i.l.bf16 %v3400_v12  ;;  %v1251_v28 = vrot.slane %v2617_v49, 4 }
  0xb9   : > { %v1104_v2 = vsel %vm487_vm2, %v1103_v37, %v2662_v43  ;;  %v3513_v13 = vperm.slane %v1400_v63, %v3301_v51  ;;  %v1242_v37 = vsel %vm487_vm2, %v2597_v3, %v1241_v22  ;;  %v4818_v22 = vrot.slane %v3382_v15, 4 }
  0xba   : > { %v3504_v17 = vrot.slane %v4815_v29, 4  ;;  %v3518_v29 = vperm.slane %v1240_v23, %v3234_v16  ;;  %v3530_v60 = vperm.slane %v1104_v2, %v3234_v16  ;;  %v4819_v2 = vrot.slane %v3370_v45, 4 }
  0xbb   : > { %v3471_v33 = vpop.permute.xlu0 %2620  ;;  %4816 = vst [vmem:[#allocation28_spill] sm:$0xff] %v3513_v13 }
  0xbc   : > { %v2626_v6 = vpop.permute.xlu1 %2625  ;;  %v2622_v41 = vunpack.i.l.bf16 %v3471_v33 }
  0xbd   : > { %v2628_v27 = vunpack.i.h.bf16 %v2626_v6  ;;  %v2627_v1 = vunpack.i.l.bf16 %v2626_v6  ;;  %v1427_v6 = vrot.slane %v3488_v25, 4 }
  0xbe   : > { %v1253_v63 = vrot.slane %v2622_v41, 4  ;;  %v1252_v23 = vsel %vm487_vm2, %v1251_v28, %v2622_v41  ;;  %v1466_v28 = vsel %vm487_vm2, %v3349_v30, %v4819_v2  ;;  %v3563_v30 = vpop.permute.xlu2 %2675  ;;  %v3569_v41 = vsel %vm487_vm2, %v1151_v7, %v3530_v60 }
  0xbf   : > { %v860_v8 = vsel %vm487_vm2, %v859_v40, %v2628_v27  ;;  %1608 = vrot.lane.b32.xlu1 %v3474_v38, %s2943_s8  ;;  %v848_v26 = vsel %vm487_vm2, %v847_v42, %v2627_v1  ;;  %v1105_v38 = vrot.slane %v2662_v43, 4  ;;  %v861_v40 = vrot.slane %v2628_v27, 4  ;;  %4822 = vst [vmem:[#allocation30_spill] sm:$0xff] %v3563_v30 }
  0xc0   : > { %v3508_v39 = vperm.slane %v860_v8, %v3234_v16  ;;  %v3523_v8 = vperm.slane %v3328_v24, %v3301_v51  ;;  %v854_v47 = vperm.slane %v848_v26, %v3234_v16  ;;  %v4817_v24 = vunpack.i.l.bf16 %v3418_v21 }
  0xc1   : > { %v1426_v43 = vsel %vm487_vm2, %v3513_v13, %v4818_v22  ;;  %v3544_v3 = vsel %vm487_vm2, %v1427_v6, %v3441_v19  ;;  %v3551_v27 = vperm.slane %v1242_v37, %v3234_v16  ;;  %v4756_v26 = vunpack.i.h.bf16 %v3471_v33 }
  0xc2   : > { %v895_v9 = vrot.slane %v3508_v39, 4  ;;  %v723_v31 = vrot.slane %v4817_v24, 4  ;;  %v4821_v22 = vunpack.i.h.bf16 %v3313_v10  ;;  %v1254_v6 = vsel %vm487_vm2, %v2617_v49, %v1253_v63 }
  0xc3   : > { %v3527_v20 = vpop.permute.xlu0 %2635  ;;  %4820 = vst [vmem:[#allocation29_spill] sm:$0xff] %v3551_v27  ;;  %v3561_v45 = vperm.slane %v1252_v23, %v3234_v16  ;;  %v849_v15 = vrot.slane %v2627_v1, 4  ;;  %v4823_v37 = vunpack.i.h.bf16 %v3464_v44  ;;  %v3588_v7 = vrot.slane %v4756_v26, 4 }
  0xc4   : > { %v3534_v34 = vpop.permute.xlu1 %2640  ;;  %v896_v24 = vsel %vm487_vm2, %v895_v9, %v854_v47  ;;  %v1106_v42 = vsel %vm487_vm2, %v4821_v22, %v1105_v38  ;;  %v4824_v9 = vunpack.i.h.bf16 %v3418_v21  ;;  %v3575_v38 = vperm.slane %v1466_v28, %v3301_v51 }
  0xc5   : > { %v613_v2 = vrot.slane %v4823_v37, 4  ;;  %v2637_v1 = vunpack.i.l.bf16 %v3527_v20  ;;  %v2643_v63 = vunpack.i.h.bf16 %v3534_v34  ;;  %v3581_v23 = vperm.slane %v896_v24, %v3301_v51 }
  0xc6   : > { %v862_v10 = vsel %vm487_vm2, %v4824_v9, %v861_v40  ;;  %4825 = vst [vmem:[#allocation31_spill] sm:$0xff] %v3575_v38  ;;  %v3584_v22 = vperm.slane %v1106_v42, %v3234_v16  ;;  %v3591_v40 = vperm.slane %v1254_v6, %v3234_v16  ;;  %v1287_v37 = vrot.slane %v3561_v45, 4 }
  0xc7   : > { %4826 = vst [vmem:[#allocation32_spill] sm:$0xff] %v3581_v23  ;;  %v3596_v9 = vperm.slane %v862_v10, %v3234_v16  ;;  %v4829_v24 = vunpack.i.h.bf16 %v3358_v0  ;;  %v897_v42 = vrot.slane %v854_v47, 4  ;;  %v2638_v27 = vunpack.i.h.bf16 %v3527_v20 }
  0xc8   : > { %4827 = vst [vmem:[#allocation33_spill] sm:$0xff] %v3584_v22  ;;  %v2642_v26 = vunpack.i.l.bf16 %v3534_v34  ;;  %v4830_v6 = vrot.slane %v3434_v14, 4  ;;  %v4761_v10 = vunpack.i.l.bf16 %v3563_v30  ;;  %v611_v38 = vrot.slane %v2637_v1, 4 }
  0xc9   : > { %4828 = vst [vmem:[#allocation34_spill] sm:$0xff] %v3591_v40  ;;  %v850_v49 = vsel %vm487_vm2, %v4829_v24, %v849_v15  ;;  %v724_v0 = vsel %vm487_vm2, %v723_v31, %v2643_v63  ;;  %v725_v34 = vrot.slane %v2643_v63, 4  ;;  %v747_v15 = vrot.slane %v2638_v27, 4 }
  0xca   : > { %v922_v28 = vsel %vm487_vm2, %v3581_v23, %v4830_v6  ;;  %v3614_v20 = vperm.slane %v850_v49, %v3234_v16  ;;  %v898_v6 = vsel %vm487_vm2, %v3508_v39, %v897_v42  ;;  %v614_v49 = vsel %vm487_vm2, %v2637_v1, %v613_v2 }
  0xcb   : > { %v2651_v13 = vpop.permute.xlu0 %2650  ;;  %v2694_v19 = vpack.i.bf16 %v922_v28, %v1426_v43  ;;  %v4831_v43 = vunpack.i.h.bf16 %v3563_v30  ;;  %v3628_v63 = vperm.slane %v724_v0, %v3234_v16  ;;  %v1216_v14 = vsel %vm487_vm2, %v3412_v58, %v2642_v26 }
  0xcc   : > { %v3607_v25 = vpop.permute.xlu1 %2655  ;;  %v2653_v24 = vunpack.i.h.bf16 %v2651_v13  ;;  %v4833_v1 = vunpack.i.l.bf16 %v3418_v21  ;;  %v3661_v39 = vperm.slane %v898_v6, %v3301_v51  ;;  %v4837_v40 = vunpack.i.h.bf16 %v3244_v52 }
  0xcd   : > { %v2658_v47 = vunpack.i.h.bf16 %v3607_v25  ;;  %2695 = vrot.lane.b32.xlu1 %v2694_v19, %s2944_s9  ;;  %v3624_v28 = vrot.slane %v4831_v43, 4  ;;  %v4832_v19 = vunpack.i.h.bf16 %v3464_v44  ;;  %v3642_v43 = vsel %vm487_vm2, %v1287_v37, %v3518_v29 }
  0xce   : > { %v726_v58 = vsel %vm487_vm2, %v4833_v1, %v725_v34  ;;  %v748_v44 = vsel %vm487_vm2, %v747_v15, %v2653_v24  ;;  %4836 = vst [vmem:[#allocation37_spill] sm:$0xff] %v3661_v39  ;;  %v759_v34 = vrot.slane %v3628_v63, 4 }
  0xcf   : > { %v712_v31 = vsel %vm487_vm2, %v3504_v17, %v2658_v47  ;;  %v612_v42 = vsel %vm487_vm2, %v611_v38, %v4832_v19  ;;  %v3638_v17 = vrot.slane %v4761_v10, 4  ;;  %v3653_v38 = vperm.slane %v614_v49, %v3234_v16 }
  0xd0   : > { %v3649_v0 = vperm.slane %v712_v31, %v3234_v16  ;;  %v1217_v19 = vrot.slane %v2642_v26, 4  ;;  %v3656_v10 = vperm.slane %v1216_v14, %v3234_v16  ;;  %v3664_v21 = vperm.slane %v612_v42, %v3234_v16 }
  0xd1   : > { %4834 = vst [vmem:[#allocation35_spill] sm:$0xff] %v3653_v38  ;;  %v2652_v31 = vunpack.i.l.bf16 %v2651_v13  ;;  %v3669_v49 = vperm.slane %v726_v58, %v3234_v16  ;;  %v749_v26 = vrot.slane %v2653_v24, 4  ;;  %v3672_v14 = vperm.slane %v748_v44, %v3234_v16 }
  0xd2   : > { %v760_v6 = vsel %vm487_vm2, %v759_v34, %v3649_v0  ;;  %v2657_v42 = vunpack.i.l.bf16 %v3607_v25  ;;  %v1218_v58 = vsel %vm487_vm2, %v4837_v40, %v1217_v19  ;;  %v4838_v24 = vrot.slane %v3385_v50, 4 }
  0xd3   : > { %v3658_v37 = vpop.permute.xlu0 %2665  ;;  %v713_v22 = vrot.slane %v2658_v47, 4  ;;  %v923_v25 = vrot.slane %v3661_v39, 4  ;;  %v736_v34 = vsel %vm487_vm2, %v3588_v7, %v2652_v31  ;;  %v737_v38 = vrot.slane %v2652_v31, 4 }
  0xd4   : > { %4835 = vst [vmem:[#allocation36_spill] sm:$0xff] %v3658_v37  ;;  %v2671_v1 = vpop.permute.xlu1 %2670  ;;  %v4768_v15 = vunpack.i.l.bf16 %v3658_v37  ;;  %v2668_v23 = vunpack.i.h.bf16 %v3658_v37  ;;  %v1264_v44 = vsel %vm487_vm2, %v4838_v24, %v3656_v10  ;;  %v750_v19 = vsel %vm487_vm2, %v2638_v27, %v749_v26 }
  0xd5   : > { %v2672_v2 = vunpack.i.l.bf16 %v2671_v1  ;;  %1648 = vrot.lane.b32.xlu1 %v3482_v32, %s2944_s9  ;;  %v3699_v24 = vperm.slane %v760_v6, %v3301_v51  ;;  %v647_v32 = vrot.slane %v3664_v21, 4  ;;  %v1027_v7 = vrot.slane %v2657_v42, 4 }
  0xd6   : > { %v599_v13 = vrot.slane %v4768_v15, 4  ;;  %v783_v15 = vrot.slane %v3672_v14, 4  ;;  %v2673_v31 = vunpack.i.h.bf16 %v2671_v1  ;;  %v742_v30 = vperm.slane %v736_v34, %v3234_v16 }
  0xd7   : > { %v1016_v52 = vsel %vm487_vm2, %v3493_v5, %v2672_v2  ;;  %4839 = vst [vmem:[#allocation38_spill] sm:$0xff] %v3699_v24  ;;  %v924_v27 = vsel %vm487_vm2, %v923_v25, %v3523_v8  ;;  %v3710_v26 = vperm.slane %v1264_v44, %v3301_v51  ;;  %v3713_v6 = vperm.slane %v1218_v58, %v3234_v16 }
  0xd8   : > { %v600_v40 = vsel %vm487_vm2, %v599_v13, %v2668_v23  ;;  %v3705_v5 = vperm.slane %v1016_v52, %v3234_v16  ;;  %v4842_v13 = vunpack.i.l.bf16 %v3400_v12  ;;  %v3719_v1 = vperm.slane %v750_v19, %v3234_v16 }
  0xd9   : > { %v606_v47 = vperm.slane %v600_v40, %v3234_v16  ;;  %4840 = vst [vmem:[#allocation39_spill] sm:$0xff] %v3710_v26  ;;  %v2709_v34 = vpack.i.bf16 %v924_v27, %v3544_v3  ;;  %v4843_v52 = vunpack.i.h.bf16 %v3471_v33  ;;  %v784_v44 = vsel %vm487_vm2, %v783_v15, %v742_v30  ;;  %v4867_v27 = vld [vmem:[#allocation9_spill] sm:$0xff] }
  0xda   : > { %4841 = vst [vmem:[#allocation40_spill] sm:$0xff] %v3713_v6  ;;  %v714_v40 = vsel %vm487_vm2, %v4842_v13, %v713_v22  ;;  %v809_v58 = vrot.slane %v3699_v24, 4  ;;  %v1029_v12 = vrot.slane %v2673_v31, 4  ;;  %v1028_v22 = vsel %vm487_vm2, %v1027_v7, %v2673_v31 }
  0xdb   : > { %v738_v37 = vsel %vm487_vm2, %v4843_v52, %v737_v38  ;;  %v649_v25 = vrot.slane %v606_v47, 4  ;;  %v3725_v39 = vpop.permute.xlu0 %2680  ;;  %v3732_v19 = vperm.slane %v784_v44, %v3301_v51  ;;  %v3735_v3 = vperm.slane %v714_v40, %v3234_v16 }
  0xdc   : > { %v761_v33 = vrot.slane %v3649_v0, 4  ;;  %v1065_v38 = vrot.slane %v3705_v5, 4  ;;  %v1313_v15 = vrot.slane %v3710_v26, 4  ;;  %v3743_v13 = vperm.slane %v738_v37, %v3234_v16 }
  0xdd   : > { %4844 = vst [vmem:[#allocation41_spill] sm:$0xff] %v3732_v19  ;;  %2710 = vrot.lane.b32.xlu1 %v2709_v34, %s2941_s27  ;;  %v785_v7 = vrot.slane %v742_v30, 4  ;;  %v2682_v31 = vunpack.i.l.bf16 %v3725_v39  ;;  %v3747_v52 = vperm.slane %v1028_v22, %v3234_v16  ;;  %v810_v0 = vsel %vm487_vm2, %v3732_v19, %v809_v58  ;;  %v3990_v19 = vld [vmem:[%s3062_s16 + $0x8] sm:$0xff] }
  0xde   : > { %v3753_v40 = vperm.slane %v3642_v43, %v3301_v51  ;;  %v650_v34 = vsel %vm487_vm2, %v3664_v21, %v649_v25  ;;  %v3757_v44 = vrot.slane %v2672_v2, 4  ;;  %v3760_v37 = vsel %vm487_vm2, %v2657_v42, %v1029_v12 }
  0xdf   : > { %v3762_v30 = vrot.slane %v2668_v23, 4  ;;  %v648_v22 = vsel %vm487_vm2, %v647_v32, %v606_v47  ;;  %v3767_v6 = vsel %vm487_vm2, %v3747_v52, %v1065_v38  ;;  %v4846_v58 = vrot.slane %v3346_v56, 4 }
  0xe0   : > { %4845 = vst [vmem:[#allocation42_spill] sm:$0xff] %v3753_v40  ;;  %v1314_v43 = vsel %vm487_vm2, %v3753_v40, %v1313_v15  ;;  %v4847_v21 = vrot.slane %v3530_v60, 4  ;;  %v512_v23 = vsel %vm487_vm2, %v3638_v17, %v2682_v31  ;;  %v3784_v47 = vperm.slane %v650_v34, %v3301_v51 }
  0xe1   : > { %v674_v2 = vsel %vm487_vm2, %v3394_v46, %v4846_v58  ;;  %v2714_v42 = vpack.i.bf16 %v810_v0, %v1314_v43  ;;  %v4848_v60 = vrot.slane %v3272_v4, 4  ;;  %v3797_v38 = vperm.slane %v648_v22, %v3301_v51 }
  0xe2   : > { %v1154_v12 = vsel %vm487_vm2, %v3461_v62, %v4847_v21  ;;  %v3787_v32 = vperm.slane %v674_v2, %v3301_v51  ;;  %v671_v17 = vrot.slane %v3394_v46, 4  ;;  %v3806_v34 = vperm.slane %v3569_v41, %v3301_v51 }
  0xe3   : > { %v3790_v25 = vperm.slane %v1154_v12, %v3301_v51  ;;  %v1178_v62 = vsel %vm487_vm2, %v3286_v59, %v4848_v60  ;;  %4849 = vst [vmem:[#allocation43_spill] sm:$0xff] %v3797_v38  ;;  %v1175_v43 = vrot.slane %v3286_v59, 4  ;;  %v697_v22 = vrot.slane %v3797_v38, 4 }
  0xe4   : > { %v699_v15 = vrot.slane %v3787_v32, 4  ;;  %v3802_v0 = vperm.slane %v1178_v62, %v3301_v51  ;;  %v672_v58 = vsel %vm487_vm2, %v671_v17, %v3346_v56  ;;  %v762_v46 = vsel %vm487_vm2, %v3628_v63, %v761_v33 }
  0xe5   : > { %2715 = vrot.lane.b32.xlu1 %v2714_v42, %s2944_s9  ;;  %v786_v2 = vsel %vm487_vm2, %v3672_v14, %v785_v7  ;;  %v3821_v59 = vperm.slane %v672_v58, %v3301_v51  ;;  %v1176_v12 = vsel %vm487_vm2, %v1175_v43, %v3272_v4  ;;  %v2683_v56 = vunpack.i.h.bf16 %v3725_v39 }
  0xe6   : > { %v700_v21 = vsel %vm487_vm2, %v699_v15, %v3784_v47  ;;  %v1203_v41 = vrot.slane %v3802_v0, 4  ;;  %v3827_v42 = vperm.slane %v1176_v12, %v3301_v51  ;;  %v1201_v63 = vrot.slane %v3806_v34, 4 }
  0xe7   : > { %4850 = vst [vmem:[#allocation44_spill] sm:$0xff] %v3821_v59  ;;  %v3831_v14 = vperm.slane %v762_v46, %v3301_v51  ;;  %v3834_v33 = vperm.slane %v512_v23, %v3234_v16  ;;  %v698_v60 = vsel %vm487_vm2, %v3821_v59, %v697_v22  ;;  %v4851_v4 = vrot.slane %v3656_v10, 4  ;;  %v4902_v59 = vld [vmem:[#allocation29_spill] sm:$0xff] }
  0xe8   : > { %v1204_v7 = vsel %vm487_vm2, %v1203_v41, %v3790_v25  ;;  %v1202_v15 = vsel %vm487_vm2, %v3827_v42, %v1201_v63  ;;  %v3847_v43 = vperm.slane %v786_v2, %v3301_v51  ;;  %v4852_v22 = vrot.slane %v3518_v29, 4 }
  0xe9   : > { %v1266_v62 = vsel %vm487_vm2, %v3385_v50, %v4851_v4  ;;  %v2684_v17 = vpack.i.bf16 %v700_v21, %v1204_v7  ;;  %v813_v23 = vrot.slane %v3831_v14, 4  ;;  %v2689_v58 = vpack.i.bf16 %v698_v60, %v1202_v15 }
  0xea   : > { %v3851_v46 = vperm.slane %v1266_v62, %v3301_v51  ;;  %v1290_v10 = vsel %vm487_vm2, %v3561_v45, %v4852_v22  ;;  %v4853_v50 = vrot.slane %v3309_v48, 4  ;;  %v885_v29 = vrot.slane %v3340_v36, 4 }
  0xeb   : > { %2685 = vrot.lane.b32.xlu2 %v2684_v17, %s2941_s27  ;;  %v814_v2 = vsel %vm487_vm2, %v3847_v43, %v813_v23  ;;  %v3865_v41 = vperm.slane %v1290_v10, %v3301_v51  ;;  %2690 = vrot.lane.b32.xlu0 %v2689_v58, %s2944_s9  ;;  %v4855_v48 = vrot.slane %v3614_v20, 4  ;;  %v4856_v63 = vrot.slane %v3251_v54, 4 }
  0xec   : > { %v960_v21 = vsel %vm487_vm2, %v4853_v50, %v3282_v57  ;;  %v1317_v45 = vrot.slane %v3851_v46, 4  ;;  %v4857_v60 = vrot.slane %v3365_v18, 4  ;;  %v524_v62 = vsel %vm487_vm2, %v3624_v28, %v2683_v56 }
  0xed   : > { %v3868_v12 = vperm.slane %v960_v21, %v3301_v51  ;;  %v910_v57 = vsel %vm487_vm2, %v3596_v9, %v4855_v48  ;;  %v1390_v7 = vsel %vm487_vm2, %v3256_v55, %v4856_v63  ;;  %v525_v17 = vrot.slane %v2683_v56, 4 }
  0xee   : > { %v1414_v4 = vsel %vm487_vm2, %v3477_v35, %v4857_v60  ;;  %v886_v15 = vsel %vm487_vm2, %v3264_v61, %v885_v29  ;;  %v3890_v23 = vperm.slane %v910_v57, %v3301_v51  ;;  %v3894_v58 = vrot.slane %v2682_v31, 4  ;;  %v4859_v60 = vld [vmem:[#allocation24_spill] sm:$0xff] }
  0xef   : > { %4854 = vst [vmem:[#allocation45_spill] sm:$0xff] %v3868_v12  ;;  %v1318_v22 = vsel %vm487_vm2, %v3865_v41, %v1317_v45  ;;  %v983_v10 = vrot.slane %v3868_v12, 4  ;;  %v3900_v50 = vperm.slane %v1414_v4, %v3301_v51  ;;  %v561_v28 = vrot.slane %v3834_v33, 4 }
  0xf0   : > { %v2729_v56 = vpack.i.bf16 %v814_v2, %v1318_v22  ;;  %v3904_v21 = vperm.slane %v886_v15, %v3301_v51  ;;  %v931_v29 = vrot.slane %v3890_v23, 4  ;;  %v3908_v39 = vperm.slane %v1390_v7, %v3301_v51  ;;  %v3971_v22 = vld [vmem:[%s3062_s16 + $0x18] sm:$0xff] }
  0xf1   : > { %v1435_v31 = vrot.slane %v3900_v50, 4  ;;  %v701_v45 = vrot.slane %v3784_v47, 4  ;;  %v1205_v48 = vrot.slane %v3790_v25, 4  ;;  %v4858_v57 = vrot.slane %v3397_v53, 4 }
  0xf2   : > { %2730 = vrot.lane.b32.xlu1 %v2729_v56, %s2945_s10  ;;  %v932_v2 = vsel %vm487_vm2, %v931_v29, %v3904_v21  ;;  %v925_v7 = vrot.slane %v3523_v8, 4  ;;  %v1429_v4 = vrot.slane %v4859_v60, 4  ;;  %v984_v47 = vsel %vm487_vm2, 0.0, %v983_v10  ;;  %v4861_v10 = vld [vmem:[#allocation37_spill] sm:$0xff]  ;;  %v4862_v29 = vld [vmem:[#allocation27_spill] sm:$0xff] }
  0xf3   : > { %v1476_v63 = vsel %vm487_vm2, %v4858_v57, %v3333_v11  ;;  %v1436_v25 = vsel %vm487_vm2, %v1435_v31, %v3908_v39  ;;  %v3927_v15 = vsel %vm487_vm2, %v3787_v32, %v701_v45  ;;  %v3931_v53 = vsel %vm487_vm2, %v3802_v0, %v1205_v48  ;;  %v4860_v11 = vld [vmem:[#allocation31_spill] sm:$0xff]  ;;  %1508 = vrot.lane.b32.xlu0 %v984_v47, %s2944_s9  ;;  %v4863_v0 = vld [vmem:[#allocation16_spill] sm:$0xff]  ;;  %v3961_v47 = vld [vmem:[%s3062_s16 + $0x38] sm:$0xff] }
  0xf4   : > { %1668 = vrot.lane.b32.xlu2 %v4860_v11, %s2941_s27  ;;  %v2744_v8 = vpack.i.bf16 %v932_v2, %v1436_v25  ;;  %v3939_v56 = vsel %vm487_vm2, %v4861_v10, %v925_v7  ;;  %v3943_v32 = vsel %vm487_vm2, %v4862_v29, %v1429_v4  ;;  %v985_v31 = vrot.slane %v4863_v0, 4  ;;  %v4864_v48 = vld [vmem:[#allocation8_spill] sm:$0xff]  ;;  %v4865_v7 = vld [vmem:[#allocation30_spill] sm:$0xff]  ;;  %v3965_v0 = vld [vmem:[%s3062_s16 + $0x50] sm:$0xff] }
  0xf5   : > { %v486_v2 = vrot.slane %v4864_v48, 4  ;;  %v3951_v57 = vld [vmem:[%s3062_s16 + $0x48] sm:$0xff]  ;;  %v4866_v25 = vunpack.i.h.bf16 %v4865_v7  ;;  %v3958_v4 = vperm.slane %v524_v62, %v3234_v16  ;;  %v991_v29 = vrot.slane %v3961_v47, 4 }
  0xf6   : > { %v499_v60 = vrot.slane %v3951_v57, 4  ;;  %v1003_v48 = vrot.slane %v3965_v0, 4  ;;  %v4868_v62 = vrot.slane %v3264_v61, 4  ;;  %v4869_v24 = vrot.slane %v3596_v9, 4  ;;  %v3999_v9 = vld [vmem:[%s3062_s16 + $0x20] sm:$0xff] }
  0xf7   : > { %v526_v10 = vsel %vm487_vm2, %v4866_v25, %v525_v17  ;;  %v488_v45 = vsel %vm487_vm2, %v486_v2, %v4867_v27  ;;  %v562_v40 = vsel %vm487_vm2, %v3958_v4, %v561_v28  ;;  %v1482_v27 = vperm.slane %v1476_v63, %v3301_v51 }
  0xf8   : > { %v500_v17 = vsel %vm487_vm2, %v499_v60, %v3971_v22  ;;  %v884_v25 = vsel %vm487_vm2, %v4868_v62, %v3340_v36  ;;  %v908_v26 = vsel %vm487_vm2, %v4869_v24, %v3614_v20  ;;  %v3987_v2 = vperm.slane %v488_v45, %v3234_v16 }
  0xf9   : > { %v992_v61 = vsel %vm487_vm2, %v991_v29, %v3990_v19  ;;  %v986_v36 = vsel %vm487_vm2, 0.0, %v985_v31  ;;  %v1004_v20 = vsel %vm487_vm2, %v1003_v48, %v3999_v9  ;;  %v890_v24 = vperm.slane %v884_v25, %v3301_v51 }
  0xfa   : > { %v3996_v60 = vperm.slane %v992_v61, %v3234_v16  ;;  %2745 = vrot.lane.b32.xlu1 %v2744_v8, %s2943_s8  ;;  %v4006_v28 = vperm.slane %v500_v17, %v3234_v16  ;;  %v537_v63 = vrot.slane %v3987_v2, 4  ;;  %v914_v45 = vperm.slane %v908_v26, %v3301_v51 }
  0xfb   : > { %v4870_v31 = vrot.slane %v3256_v55, 4  ;;  %v929_v61 = vrot.slane %v890_v24, 4  ;;  %v4871_v8 = vrot.slane %v3477_v35, 4  ;;  %v4024_v25 = vperm.slane %v1004_v20, %v3234_v16  ;;  %1548 = vrot.lane.b32.xlu0 %v986_v36, %s2945_s10 }
  0xfc   : > { %v1041_v62 = vrot.slane %v3996_v60, 4  ;;  %1708 = vrot.lane.b32.xlu2 %v1482_v27, %s2942_s30  ;;  %v538_v26 = vsel %vm487_vm2, %v4006_v28, %v537_v63  ;;  %v927_v55 = vrot.slane %v914_v45, 4  ;;  %v570_v35 = vperm.slane %v562_v40, %v3301_v51 }
  0xfd   : > { %v1388_v29 = vsel %vm487_vm2, %v4870_v31, %v3251_v54  ;;  %v1412_v17 = vsel %vm487_vm2, %v4871_v8, %v3365_v18  ;;  %v4028_v31 = vperm.slane %v526_v10, %v3234_v16  ;;  %v4033_v18 = vsel %vm487_vm2, %v914_v45, %v929_v61 }
  0xfe   : > { %v1394_v48 = vperm.slane %v1388_v29, %v3301_v51  ;;  %v1418_v54 = vperm.slane %v1412_v17, %v3301_v51  ;;  %v4037_v63 = vperm.slane %v3760_v37, %v3234_v16  ;;  %v1042_v20 = vsel %vm487_vm2, %v4024_v25, %v1041_v62  ;;  %v4874_v17 = vld [vmem:[#allocation36_spill] sm:$0xff] }
  0xff   : > { %4872 = vst [vmem:[#allocation24_spill] sm:$0xff] %v4028_v31  ;;  %v4042_v8 = vsel %vm487_vm2, %v927_v55, %v890_v24  ;;  %v4875_v36 = vunpack.i.l.bf16 %v4874_v17  ;;  %v546_v45 = vperm.slane %v538_v26, %v3301_v51  ;;  %v1074_v61 = vperm.slane %v3767_v6, %v3301_v51 }
 0x100   : > { %v1433_v29 = vrot.slane %v1394_v48, 4  ;;  %4873 = vst [vmem:[#allocation31_spill] sm:$0xff] %v4037_v63  ;;  %v1431_v10 = vrot.slane %v1418_v54, 4  ;;  %v4876_v12 = vunpack.i.l.bf16 %v4865_v7  ;;  %v1491_v24 = vrot.slane %v1482_v27, 4 }
 0x101   : > { %v602_v40 = vsel %vm487_vm2, %v4875_v36, %v3762_v30  ;;  %v571_v17 = vrot.slane %v4028_v31, 4  ;;  %v587_v30 = vrot.slane %v570_v35, 4  ;;  %v1050_v26 = vperm.slane %v1042_v20, %v3301_v51 }
 0x102   : > { %v1434_v37 = vsel %vm487_vm2, %v1418_v54, %v1433_v29  ;;  %v514_v62 = vsel %vm487_vm2, %v4876_v12, %v3894_v58  ;;  %v1432_v38 = vsel %vm487_vm2, %v1431_v10, %v1394_v48  ;;  %v4877_v54 = vld [vmem:[#allocation19_spill] sm:$0xff]  ;;  %v1075_v12 = vrot.slane %v4037_v63, 4  ;;  %v4903_v63 = vld [vmem:[#allocation34_spill] sm:$0xff] }
 0x103   : > { %v2704_v55 = vpack.i.bf16 %v4033_v18, %v1434_v37  ;;  %v2724_v6 = vpack.i.bf16 %v4042_v8, %v1432_v38  ;;  %v4878_v29 = vunpack.i.h.bf16 %v4877_v54  ;;  %v4067_v58 = vperm.slane %v602_v40, %v3234_v16  ;;  %v2868_v54 = vld [vmem:[%s3062_s16 + $0x30] sm:$0xff] }
 0x104   : > { %v4879_v27 = vpack.i.bf16 %v3927_v15, %v3931_v53  ;;  %v501_v48 = vrot.slane %v3971_v22, 4  ;;  %v4075_v18 = vperm.slane %v514_v62, %v3234_v16  ;;  %v1091_v38 = vrot.slane %v1074_v61, 4  ;;  %v2867_v15 = vld [vmem:[%s3062_s16] sm:$0xff]  ;;  %s2485_s16 = smul.u32 96, %s245_s15 }
 0x105   : > { %v1018_v7 = vsel %vm487_vm2, %v4878_v29, %v3757_v44  ;;  %v589_v20 = vrot.slane %v546_v45, 4  ;;  %v1005_v8 = vrot.slane %v3999_v9, 4  ;;  %v4880_v44 = vpack.i.bf16 %v3939_v56, %v3943_v32 }
 0x106   : > { %2750 = vrot.lane.b32.xlu1 %v4879_v27, %s2945_s10  ;;  %v1492_v10 = vsel %vm487_vm2, 0.0, %v1491_v24  ;;  %v1489_v36 = vrot.slane %v4860_v11, 4  ;;  %v489_v53 = vrot.slane %v2867_v15, 4  ;;  %v502_v22 = vsel %vm487_vm2, %v3951_v57, %v501_v48  ;;  %v4886_v15 = vld [vmem:[#allocation13_spill] sm:$0xff]  ;;  %s247_s17 = scalar_lea.vmem [#allocation2], %s2485_s16 }
 0x107   : > { %2700 = vrot.lane.b32.xlu2 %v4880_v44, %s2945_s10  ;;  %1728 = vrot.lane.b32.xlu0 %v1492_v10, %s2946_s12  ;;  %v588_v9 = vsel %vm487_vm2, %v587_v30, %v546_v45  ;;  %v1093_v40 = vrot.slane %v1050_v26, 4  ;;  %v572_v56 = vsel %vm487_vm2, %v571_v17, %v4075_v18  ;;  %v993_v32 = vrot.slane %v3990_v19, 4  ;;  %v4899_v11 = vld [vmem:[#allocation33_spill] sm:$0xff] }
 0x108   : > { %v4093_v37 = vperm.slane %v1018_v7, %v3234_v16  ;;  %v661_v62 = vrot.slane %v4067_v58, 4  ;;  %v1006_v57 = vsel %vm487_vm2, %v3965_v0, %v1005_v8  ;;  %v1092_v45 = vsel %vm487_vm2, %v1091_v38, %v1050_v26 }
 0x109   : > { %v590_v30 = vsel %vm487_vm2, %v570_v35, %v589_v20  ;;  %v4103_v17 = vperm.slane %v502_v22, %v3234_v16  ;;  %v2764_v19 = vpack.i.bf16 %v588_v9, %v1092_v45  ;;  %v490_v29 = vsel %vm487_vm2, %v2868_v54, %v489_v53  ;;  %v4883_v20 = vld [vmem:[#allocation22_spill] sm:$0xff] }
 0x10a   : > { %v4108_v7 = vperm.slane %v572_v56, %v3301_v51  ;;  %v1076_v27 = vsel %vm487_vm2, %v1075_v12, %v4093_v37  ;;  %v1094_v0 = vsel %vm487_vm2, %v1074_v61, %v1093_v40  ;;  %v1490_v48 = vsel %vm487_vm2, 0.0, %v1489_v36  ;;  %v4887_v9 = vld [vmem:[#allocation14_spill] sm:$0xff]  ;;  %v4889_v56 = vld [vmem:[#allocation12_spill] sm:$0xff] }
 0x10b   : > { %v994_v35 = vsel %vm487_vm2, %v3961_v47, %v993_v32  ;;  %v4117_v26 = vperm.slane %v1006_v57, %v3234_v16  ;;  %v2779_v38 = vpack.i.bf16 %v590_v30, %v1094_v0  ;;  %v1493_v8 = vrot.slane %v4883_v20, 4  ;;  %v4890_v57 = vld [vmem:[#allocation35_spill] sm:$0xff] }
 0x10c   : > { %4881 = vst [vmem:[#allocation37_spill] sm:$0xff] %v4108_v7  ;;  %v811_v44 = vrot.slane %v3847_v43, 4  ;;  %v4884_v12 = vrot.slane %v3719_v1, 4  ;;  %v4127_v10 = vperm.slane %v490_v29, %v3234_v16  ;;  %v547_v47 = vrot.slane %v4103_v17, 4 }
 0x10d   : > { %4882 = vst [vmem:[#allocation27_spill] sm:$0xff] %v4117_v26  ;;  %v4131_v36 = vperm.slane %v1076_v27, %v3301_v51  ;;  %v4135_v53 = vperm.slane %v4886_v15, %v3234_v16  ;;  %v591_v43 = vrot.slane %v4108_v7, 4  ;;  %v4140_v22 = vperm.slane %v994_v35, %v3234_v16  ;;  %v4893_v35 = vld [vmem:[#allocation11_spill] sm:$0xff] }
 0x10e   : > { %2765 = vrot.lane.b32.xlu1 %v2764_v19, %s2941_s27  ;;  %v796_v61 = vsel %vm487_vm2, %v4884_v12, %v3743_v13  ;;  %v4888_v40 = vrot.slane %v4887_v9, 4  ;;  %v662_v45 = vsel %vm487_vm2, %v4890_v57, %v661_v62  ;;  %v1051_v30 = vrot.slane %v4117_v26, 4  ;;  %v4895_v12 = vld [vmem:[#allocation7_spill] sm:$0xff] }
 0x10f   : > { %4885 = vst [vmem:[#allocation16_spill] sm:$0xff] %v4131_v36  ;;  %2705 = vrot.lane.b32.xlu2 %v2704_v55, %s2946_s12  ;;  %2725 = vrot.lane.b32.xlu0 %v2724_v6, %s2942_s30  ;;  %v4891_v55 = vrot.slane %v3669_v49, 4  ;;  %v4155_v54 = vperm.slane %v796_v61, %v3301_v51  ;;  %v4158_v29 = vperm.slane %v662_v45, %v3301_v51  ;;  %v685_v62 = vrot.slane %v4135_v53, 4  ;;  %v4892_v6 = vld [vmem:[#allocation10_spill] sm:$0xff] }
 0x110   : > { %v638_v32 = vsel %vm487_vm2, %v4889_v56, %v4888_v40  ;;  %v4166_v0 = vperm.slane %v4892_v6, %v3234_v16  ;;  %v4894_v20 = vrot.slane %v4893_v35, 4  ;;  %v548_v61 = vsel %vm487_vm2, %v547_v47, %v4127_v10  ;;  %v4896_v40 = vld [vmem:[#allocation40_spill] sm:$0xff] }
 0x111   : > { %v772_v19 = vsel %vm487_vm2, %v4891_v55, %v3735_v3  ;;  %v4161_v27 = vperm.slane %v638_v32, %v3234_v16  ;;  %v1095_v9 = vrot.slane %v4131_v36, 4  ;;  %v4897_v56 = vld [vmem:[#allocation20_spill] sm:$0xff]  ;;  %v709_v55 = vrot.slane %v4158_v29, 4 }
 0x112   : > { %v1142_v15 = vsel %vm487_vm2, %v4895_v12, %v4894_v20  ;;  %v4898_v32 = vrot.slane %v4897_v56, 4  ;;  %v4900_v20 = vrot.slane %v4899_v11, 4  ;;  %v4901_v12 = vld [vmem:[#allocation25_spill] sm:$0xff]  ;;  %v1189_v24 = vrot.slane %v4166_v0, 4 }
 0x113   : > { %v686_v6 = vsel %vm487_vm2, %v4161_v27, %v685_v62  ;;  %v4183_v35 = vperm.slane %v1142_v15, %v3234_v16  ;;  %v4904_v36 = vrot.slane %v4903_v63, 4  ;;  %v535_v15 = vrot.slane %v4006_v28, 4 }
 0x114   : > { %v1276_v45 = vsel %vm487_vm2, %v4898_v32, %v4896_v40  ;;  %v1166_v47 = vsel %vm487_vm2, %v4901_v12, %v4900_v20  ;;  %v4195_v31 = vperm.slane %v686_v6, %v3301_v51  ;;  %v4203_v16 = vperm.slane %v548_v61, %v3301_v51 }
 0x115   : > { %v1300_v32 = vsel %vm487_vm2, %v4904_v36, %v4902_v59  ;;  %v4198_v62 = vperm.slane %v1166_v47, %v3301_v51  ;;  %v1052_v20 = vsel %vm487_vm2, %v1051_v30, %v4140_v22  ;;  %v815_v7 = vrot.slane %v4155_v54, 4 }
 0x116   : > { %2780 = vrot.lane.b32.xlu1 %v2779_v38, %s2945_s10  ;;  %v1190_v36 = vsel %vm487_vm2, %v4183_v35, %v1189_v24  ;;  %v710_v6 = vsel %vm487_vm2, %v4195_v31, %v709_v55  ;;  %v1039_v38 = vrot.slane %v4024_v25, 4  ;;  %v1494_v61 = vsel %vm487_vm2, 0.0, %v1493_v8 }
 0x117   : > { %v4213_v47 = vperm.slane %v1190_v36, %v3301_v51  ;;  %v1213_v28 = vrot.slane %v4198_v62, 4  ;;  %1688 = vrot.lane.b32.xlu2 %v1490_v48, %s2945_s10  ;;  %v812_v30 = vsel %vm487_vm2, %v811_v44, %v3831_v14  ;;  %v4222_v26 = vperm.slane %v772_v19, %v3301_v51  ;;  %1768 = vrot.lane.b32.xlu0 %v1494_v61, %s2947_s13 }
 0x118   : > { %v4225_v24 = vperm.slane %v1300_v32, %v3301_v51  ;;  %v592_v55 = vsel %vm487_vm2, %v591_v43, %v4203_v16  ;;  %v4231_v25 = vperm.slane %v1052_v20, %v3301_v51  ;;  %v536_v14 = vsel %vm487_vm2, %v535_v15, %v3987_v2 }
 0x119   : > { %v1214_v48 = vsel %vm487_vm2, %v4213_v47, %v1213_v28  ;;  %v1315_v8 = vrot.slane %v3865_v41, 4  ;;  %v4239_v44 = vperm.slane %v1276_v45, %v3301_v51  ;;  %v933_v32 = vrot.slane %v3904_v21, 4 }
 0x11a   : > { %v2809_v19 = vpack.i.bf16 %v710_v6, %v1214_v48  ;;  %v1096_v43 = vsel %vm487_vm2, %v1095_v9, %v4231_v25  ;;  %v816_v20 = vsel %vm487_vm2, %v815_v7, %v4222_v26  ;;  %v1040_v36 = vsel %vm487_vm2, %v1039_v38, %v3996_v60 }
 0x11b   : > { %v1437_v28 = vrot.slane %v3908_v39, 4  ;;  %v2794_v2 = vpack.i.bf16 %v592_v55, %v1096_v43  ;;  %v1319_v41 = vrot.slane %v4225_v24, 4  ;;  %v4251_v45 = vperm.slane %v536_v14, %v3301_v51 }
 0x11c   : > { %v4255_v21 = vsel %vm487_vm2, %v3890_v23, %v933_v32  ;;  %v659_v9 = vrot.slane %v4890_v57, 4  ;;  %v1316_v7 = vsel %vm487_vm2, %v1315_v8, %v3851_v46  ;;  %v4905_v60 = vrot.slane %v3958_v4, 4 }
 0x11d   : > { %v4266_v15 = vsel %vm487_vm2, %v3900_v50, %v1437_v28  ;;  %v2719_v6 = vpack.i.bf16 %v812_v30, %v1316_v7  ;;  %v1320_v23 = vsel %vm487_vm2, %v1319_v41, %v4239_v44  ;;  %v1046_v57 = vperm.slane %v1040_v36, %v3301_v51 }
 0x11e   : > { %v560_v39 = vsel %vm487_vm2, %v4905_v60, %v3834_v33  ;;  %2795 = vrot.lane.b32.xlu1 %v2794_v2, %s2942_s30  ;;  %v2759_v46 = vpack.i.bf16 %v4255_v21, %v4266_v15  ;;  %v1163_v38 = vrot.slane %v4901_v12, 4  ;;  %v2734_v4 = vpack.i.bf16 %v816_v20, %v1320_v23 }
 0x11f   : > { %v4906_v33 = vrot.slane %v3747_v52, 4  ;;  %2720 = vrot.lane.b32.xlu2 %v2719_v6, %s2941_s27  ;;  %v4281_v61 = vperm.slane %v560_v39, %v3301_v51  ;;  %v585_v30 = vrot.slane %v4251_v45, 4  ;;  %v660_v55 = vsel %vm487_vm2, %v659_v9, %v4067_v58 }
 0x120   : > { %2735 = vrot.lane.b32.xlu0 %v2734_v4, %s2942_s30  ;;  %v683_v12 = vrot.slane %v4161_v27, 4  ;;  %v1164_v48 = vsel %vm487_vm2, %v1163_v38, %v4899_v11  ;;  %v1187_v52 = vrot.slane %v4183_v35, 4  ;;  %v1089_v32 = vrot.slane %v1046_v57, 4 }
 0x121   : > { %v1064_v50 = vsel %vm487_vm2, %v4906_v33, %v3705_v5  ;;  %v4907_v5 = vld [vmem:[#allocation17_spill] sm:$0xff]  ;;  %v666_v43 = vperm.slane %v660_v55, %v3301_v51  ;;  %v1170_v58 = vperm.slane %v1164_v48, %v3301_v51  ;;  %v797_v36 = vrot.slane %v3743_v13, 4 }
 0x122   : > { %v987_v14 = vrot.slane %v4907_v5, 4  ;;  %v1070_v8 = vperm.slane %v1064_v50, %v3301_v51  ;;  %v684_v20 = vsel %vm487_vm2, %v683_v12, %v4135_v53  ;;  %v1188_v27 = vsel %vm487_vm2, %v1187_v52, %v4166_v0 }
 0x123   : > { %v586_v11 = vsel %vm487_vm2, %v4281_v61, %v585_v30  ;;  %v690_v35 = vperm.slane %v684_v20, %v3301_v51  ;;  %v1194_v28 = vperm.slane %v1188_v27, %v3301_v51  ;;  %v705_v7 = vrot.slane %v666_v43, 4  ;;  %v4908_v30 = vld [vmem:[#allocation26_spill] sm:$0xff] }
 0x124   : > { %v1090_v2 = vsel %vm487_vm2, %v1070_v8, %v1089_v32  ;;  %v988_v21 = vsel %vm487_vm2, 0.0, %v987_v14  ;;  %v1209_v0 = vrot.slane %v1170_v58, 4  ;;  %v1199_v13 = vrot.slane %v3827_v42, 4 }
 0x125   : > { %v703_v41 = vrot.slane %v690_v35, 4  ;;  %v1207_v53 = vrot.slane %v1194_v28, 4  ;;  %v2739_v9 = vpack.i.bf16 %v586_v11, %v1090_v2  ;;  %v798_v60 = vsel %vm487_vm2, %v3719_v1, %v797_v36 }
 0x126   : > { %2810 = vrot.lane.b32.xlu1 %v2809_v19, %s2947_s13  ;;  %v4315_v6 = vsel %vm487_vm2, %v690_v35, %v705_v7  ;;  %v1210_v23 = vsel %vm487_vm2, %v1194_v28, %v1209_v0  ;;  %v1211_v38 = vrot.slane %v4213_v47, 4  ;;  %v1301_v42 = vrot.slane %v4902_v59, 4  ;;  %v4909_v7 = vld [vmem:[#allocation27_spill] sm:$0xff] }
 0x127   : > { %1588 = vrot.lane.b32.xlu2 %v988_v21, %s2946_s12  ;;  %v704_v39 = vsel %vm487_vm2, %v703_v41, %v666_v43  ;;  %v1208_v19 = vsel %vm487_vm2, %v1207_v53, %v1170_v58  ;;  %v1087_v4 = vrot.slane %v1070_v8, 4  ;;  %v2784_v33 = vpack.i.bf16 %v4315_v6, %v1210_v23 }
 0x128   : > { %2740 = vrot.lane.b32.xlu0 %v2739_v9, %s2944_s9  ;;  %v2769_v15 = vpack.i.bf16 %v704_v39, %v1208_v19  ;;  %v1277_v1 = vrot.slane %v4896_v40, 4  ;;  %v773_v50 = vrot.slane %v3735_v3, 4  ;;  %v989_v55 = vrot.slane %v4908_v30, 4  ;;  %v4912_v39 = vld [vmem:[#allocation16_spill] sm:$0xff] }
 0x129   : > { %v707_v12 = vrot.slane %v4195_v31, 4  ;;  %v806_v48 = vperm.slane %v798_v60, %v3301_v51  ;;  %v4328_v52 = vsel %vm487_vm2, %v1199_v13, %v3806_v34  ;;  %v1302_v59 = vsel %vm487_vm2, %v4903_v63, %v1301_v42  ;;  %v4910_v13 = vld [vmem:[#allocation37_spill] sm:$0xff] }
 0x12a   : > { %v1212_v40 = vsel %vm487_vm2, %v1211_v38, %v4198_v62  ;;  %v4337_v5 = vsel %vm487_vm2, %v1087_v4, %v1046_v57  ;;  %v990_v31 = vsel %vm487_vm2, 0.0, %v989_v55  ;;  %v817_v14 = vrot.slane %v4222_v26, 4  ;;  %v4351_v26 = vpop.permute.xlu1 %1568 }
 0x12b   : > { %v708_v47 = vsel %vm487_vm2, %v707_v12, %v4158_v29  ;;  %v774_v34 = vsel %vm487_vm2, %v3669_v49, %v773_v50  ;;  %v1278_v63 = vsel %vm487_vm2, %v4897_v56, %v1277_v1  ;;  %v819_v29 = vrot.slane %v806_v48, 4 }
 0x12c   : > { %v2799_v3 = vpack.i.bf16 %v708_v47, %v1212_v40  ;;  %v1310_v8 = vperm.slane %v1302_v59, %v3301_v51  ;;  %v1321_v62 = vrot.slane %v4239_v44, 4  ;;  %v782_v57 = vperm.slane %v774_v34, %v3301_v51 }
 0x12d   : > { %v1286_v32 = vperm.slane %v1278_v63, %v3301_v51  ;;  %v818_v49 = vsel %vm487_vm2, %v4155_v54, %v817_v14  ;;  %v549_v54 = vrot.slane %v4127_v10, 4  ;;  %v593_v41 = vrot.slane %v4203_v16, 4  ;;  %v4911_v16 = vld [vmem:[#allocation24_spill] sm:$0xff]  ;;  %v1529_v63 = vpop.permute.xlu0 %1528 }
 0x12e   : > { %v820_v56 = vsel %vm487_vm2, %v819_v29, %v782_v57  ;;  %v1323_v43 = vrot.slane %v1310_v8, 4  ;;  %v1322_v20 = vsel %vm487_vm2, %v4225_v24, %v1321_v62  ;;  %v821_v44 = vrot.slane %v782_v57, 4  ;;  %v4914_v29 = vld [vmem:[#allocation44_spill] sm:$0xff] }
 0x12f   : > { %1628 = vrot.lane.b32.xlu2 %v990_v31, %s2947_s13  ;;  %v2754_v58 = vpack.i.bf16 %v818_v49, %v1322_v20  ;;  %v1325_v36 = vrot.slane %v1286_v32, 4  ;;  %v1053_v24 = vrot.slane %v4140_v22, 4  ;;  %v573_v53 = vrot.slane %v4075_v18, 4  ;;  %v4915_v20 = vld [vmem:[#allocation43_spill] sm:$0xff] }
 0x130   : > { %2760 = vrot.lane.b32.xlu0 %v2759_v46, %s2947_s13  ;;  %v1324_v46 = vsel %vm487_vm2, %v1323_v43, %v1286_v32  ;;  %v822_v11 = vsel %vm487_vm2, %v806_v48, %v821_v44  ;;  %v550_v21 = vsel %vm487_vm2, %v4103_v17, %v549_v54  ;;  %v1097_v9 = vrot.slane %v4231_v25, 4 }
 0x131   : > { %v2774_v27 = vpack.i.bf16 %v820_v56, %v1324_v46  ;;  %v1326_v28 = vsel %vm487_vm2, %v1310_v8, %v1325_v36  ;;  %v1077_v10 = vrot.slane %v4093_v37, 4  ;;  %v1054_v0 = vsel %vm487_vm2, %v4909_v7, %v1053_v24  ;;  %v4913_v37 = vld [vmem:[#allocation31_spill] sm:$0xff] }
 0x132   : > { %v4362_v35 = vpop.permute.xlu1 %1748  ;;  %v2789_v2 = vpack.i.bf16 %v822_v11, %v1326_v28  ;;  %v594_v22 = vsel %vm487_vm2, %v4910_v13, %v593_v41  ;;  %v558_v60 = vperm.slane %v550_v21, %v3301_v51  ;;  %v574_v18 = vsel %vm487_vm2, %v4911_v16, %v573_v53 }
 0x133   : > { %v1098_v19 = vsel %vm487_vm2, %v4912_v39, %v1097_v9  ;;  %v1062_v17 = vperm.slane %v1054_v0, %v3301_v51  ;;  %v1078_v6 = vsel %vm487_vm2, %v4913_v37, %v1077_v10  ;;  %v582_v23 = vperm.slane %v574_v18, %v3301_v51  ;;  %v4916_v9 = vld [vmem:[#allocation45_spill] sm:$0xff] }
 0x134   : > { %v2804_v25 = vpack.i.bf16 %v594_v22, %v1098_v19  ;;  %v597_v38 = vrot.slane %v558_v60, 4  ;;  %v1086_v4 = vperm.slane %v1078_v6, %v3301_v51  ;;  %v695_v8 = vrot.slane %v4914_v29, 4  ;;  %v4917_v10 = vld [vmem:[#allocation21_spill] sm:$0xff]  ;;  %v4920_v29 = vld [vmem:[#allocation23_spill] sm:$0xff] }
 0x135   : > { %v1101_v1 = vrot.slane %v1062_v17, 4  ;;  %v595_v48 = vrot.slane %v582_v23, 4 }
 0x136   : > { %v598_v50 = vsel %vm487_vm2, %v582_v23, %v597_v38 }
 0x137   : > { %2755 = vrot.lane.b32.xlu2 %v2754_v58, %s2946_s12  ;;  %v1102_v30 = vsel %vm487_vm2, %v1086_v4, %v1101_v1  ;;  %v596_v47 = vsel %vm487_vm2, %v595_v48, %v558_v60  ;;  %v696_v58 = vsel %vm487_vm2, %v695_v8, %v4915_v20  ;;  %v4918_v48 = vld [vmem:[#allocation32_spill] sm:$0xff] }
 0x138   : > { %2775 = vrot.lane.b32.xlu0 %v2774_v27, %s2943_s8  ;;  %v2819_v12 = vpack.i.bf16 %v598_v50, %v1102_v30 }
 0x13f   : > { %2770 = vrot.lane.b32.xlu2 %v2769_v15, %s2942_s30  ;;  %v4385_v15 = vpop.permute.xlu1 %1608 }
 0x140   : > { %2790 = vrot.lane.b32.xlu0 %v2789_v2, %s2947_s13 }
 0x145   : > { %v2686_v42 = vpop.permute.xlu2 %2685 }
 0x146   : > { %v2688_v56 = vunpack.i.h.bf16 %v2686_v42  ;;  %v2687_v43 = vunpack.i.l.bf16 %v2686_v42 }
 0x147   : > { %2785 = vrot.lane.b32.xlu2 %v2784_v33, %s2946_s12  ;;  %v4395_v55 = vpop.permute.xlu1 %2695  ;;  %v1099_v33 = vrot.slane %v1086_v4, 4 }
 0x148   : > { %2805 = vrot.lane.b32.xlu0 %v2804_v25, %s2946_s12 }
 0x149   : > { %v1100_v40 = vsel %vm487_vm2, %v1099_v33, %v1062_v17  ;;  %v4919_v33 = vld [vmem:[#allocation28_spill] sm:$0xff] }
 0x14a   : > { %v2814_v31 = vpack.i.bf16 %v596_v47, %v1100_v40  ;;  %v2698_v47 = vunpack.i.h.bf16 %v4395_v55  ;;  %v2697_v40 = vunpack.i.l.bf16 %v4395_v55 }
 0x14e   : > { %v1669_v59 = vpop.permute.xlu2 %1668 }
 0x14f   : > { %2800 = vrot.lane.b32.xlu2 %v2799_v3, %s2943_s8  ;;  %v1649_v14 = vpop.permute.xlu1 %1648 }
 0x150   : > { %2820 = vrot.lane.b32.xlu0 %v2819_v12, %s2947_s13  ;;  %v1821_v7 = vsel %vm1775_vm3, %v4917_v10, %v1649_v14 }
 0x151   : > { %v1826_v60 = vsel %vm1781_vm4, %v1821_v7, %v1669_v59  ;;  %v1423_v59 = vrot.slane %v4919_v33, 4 }
 0x156   : > { %v1709_v34 = vpop.permute.xlu2 %1708 }
 0x157   : > { %2815 = vrot.lane.b32.xlu2 %v2814_v31, %s2943_s8  ;;  %v4405_v57 = vpop.permute.xlu1 %2710 }
 0x158   : > { %v2712_v31 = vunpack.i.l.bf16 %v4405_v57 }
 0x15d   : > { %v2691_v3 = vpop.permute.xlu0 %2690 }
 0x15e   : > { %v2693_v32 = vunpack.i.h.bf16 %v2691_v3  ;;  %v2692_v49 = vunpack.i.l.bf16 %v2691_v3  ;;  %v4921_v3 = vld [vmem:[#allocation18_spill] sm:$0xff] }
 0x15f   : > { %v4420_v28 = vpop.permute.xlu1 %2715 }
 0x160   : > { %v1777_v46 = vsel %vm1775_vm3, %v696_v58, %v2693_v32  ;;  %v1818_v27 = vsel %vm1775_vm3, %v4328_v52, %v2692_v49  ;;  %v1424_v32 = vsel %vm487_vm2, %v1423_v59, %v4921_v3  ;;  %v2948_v59 = vmov 0  }
 0x161   : > { %v4403_v62 = vpop.permute.xlu2 %2700  ;;  %v4413_v44 = vsel %vm1781_vm4, %v1777_v46, %v2688_v56  ;;  %v4416_v36 = vsel %vm1781_vm4, %v1818_v27, %v2687_v43  ;;  %2824 = vset.pattern.permute.xlu1 %v2948_v59  ;;  %2860 = vset.pattern.permute.xlu0 %v2948_v59 }
 0x162   : > { %v2703_v14 = vunpack.i.h.bf16 %v4403_v62 }
 0x165   : > { %v1509_v54 = vpop.permute.xlu0 %1508 }
 0x166   : > { %v1780_v52 = vsel %vm1775_vm3, %v4916_v9, %v1509_v54 }
 0x167   : > { %v4422_v41 = vpop.permute.xlu1 %2730  ;;  %v1786_v13 = vsel %vm1781_vm4, %v1780_v52, %v1529_v63 }
 0x169   : > { %v4418_v11 = vpop.permute.xlu2 %2705 }
 0x16d   : > { %v1549_v24 = vpop.permute.xlu0 %1548 }
 0x16e   : > { %v1792_v16 = vsel %vm1787_vm5, %v1786_v13, %v1549_v24  ;;  %v2708_v24 = vunpack.i.h.bf16 %v4418_v11 }
 0x16f   : > { %v4430_v0 = vpop.permute.xlu1 %2745  ;;  %v1798_v19 = vsel %vm1793_vm6, %v1792_v16, %v4351_v26 }
 0x170   : > { %v2748_v10 = vunpack.i.h.bf16 %v4430_v0  ;;  %v2747_v7 = vunpack.i.l.bf16 %v4430_v0  ;;  %v4923_v0 = vld [vmem:[#allocation42_spill] sm:$0xff] }
 0x171   : > { %v1689_v2 = vpop.permute.xlu2 %1688 }
 0x172   : > { %v1831_v39 = vsel %vm1787_vm5, %v1826_v60, %v1689_v2 }
 0x173   : > { %v1836_v17 = vsel %vm1793_vm6, %v1831_v39, %v1709_v34  ;;  %v2702_v34 = vunpack.i.l.bf16 %v4403_v62 }
 0x178   : > { %v4443_v38 = vpop.permute.xlu1 %2750 }
 0x179   : > { %v4424_v53 = vpop.permute.xlu2 %2720  ;;  %v1729_v21 = vpop.permute.xlu0 %1728  ;;  %v2753_v3 = vunpack.i.h.bf16 %v4443_v38 }
 0x17a   : > { %v1841_v37 = vsel %vm1799_vm7, %v1836_v17, %v1729_v21  ;;  %v2707_v21 = vunpack.i.l.bf16 %v4418_v11  ;;  %v2718_v11 = vunpack.i.h.bf16 %v4420_v28 }
 0x17b   : > { %v1846_v26 = vsel %vm1805_vm8, %v1841_v37, %v4362_v35  ;;  %v2713_v35 = vunpack.i.h.bf16 %v4405_v57  ;;  %v1820_v57 = vsel %vm1775_vm3, %v1424_v32, %v2697_v40  ;;  %v2752_v32 = vunpack.i.l.bf16 %v4443_v38 }
 0x17c   : > { %v1825_v62 = vsel %vm1781_vm4, %v1820_v57, %v2712_v31 }
 0x17d   : > { %v1830_v46 = vsel %vm1787_vm5, %v1825_v62, %v2702_v34 }
 0x180   : > { %v4453_v12 = vpop.permute.xlu1 %2765 }
 0x181   : > { %v1589_v22 = vpop.permute.xlu2 %1588  ;;  %v2726_v18 = vpop.permute.xlu0 %2725 }
 0x182   : > { %v1804_v25 = vsel %vm1799_vm7, %v1798_v19, %v1589_v22  ;;  %v2728_v49 = vunpack.i.h.bf16 %v2726_v18  ;;  %v2727_v56 = vunpack.i.l.bf16 %v2726_v18  ;;  %v4922_v18 = vld [vmem:[#allocation41_spill] sm:$0xff] }
 0x183   : > { %v1810_v23 = vsel %vm1805_vm8, %v1804_v25, %v4385_v15  ;;  %v919_v15 = vrot.slane %v4918_v48, 4  ;;  %v807_v39 = vrot.slane %v4922_v18, 4  ;;  %v2717_v25 = vunpack.i.l.bf16 %v4420_v28  ;;  %v4925_v28 = vld [vmem:[#allocation38_spill] sm:$0xff] }
 0x184   : > { %v1835_v54 = vsel %vm1793_vm6, %v1830_v46, %v2727_v56  ;;  %v583_v46 = vrot.slane %v4281_v61, 4 }
 0x185   : > { %v920_v8 = vsel %vm487_vm2, %v919_v15, %v4920_v29  ;;  %v1840_v52 = vsel %vm1799_vm7, %v1835_v54, %v2707_v21  ;;  %v808_v15 = vsel %vm487_vm2, %v807_v39, %v4925_v28  ;;  %v2733_v29 = vunpack.i.h.bf16 %v4422_v41 }
 0x186   : > { %v1779_v55 = vsel %vm1775_vm3, %v920_v8, %v2698_v47  ;;  %v1845_v17 = vsel %vm1805_vm8, %v1840_v52, %v2747_v7  ;;  %v1778_v47 = vsel %vm1775_vm3, %v808_v15, %v2718_v11  ;;  %v2732_v8 = vunpack.i.l.bf16 %v4422_v41 }
 0x187   : > { %v1785_v20 = vsel %vm1781_vm4, %v1779_v55, %v2713_v35  ;;  %v1828_v52 = vsel %vm1787_vm5, %v4416_v36, %v2752_v32  ;;  %v2767_v28 = vunpack.i.l.bf16 %v4453_v12 }
 0x188   : > { %v1791_v58 = vsel %vm1787_vm5, %v1785_v20, %v2703_v14  ;;  %v4479_v2 = vpop.permute.xlu1 %2780 }
 0x189   : > { %v1629_v6 = vpop.permute.xlu2 %1628  ;;  %v1769_v42 = vpop.permute.xlu0 %1768  ;;  %v1797_v27 = vsel %vm1793_vm6, %v1791_v58, %v2728_v49 }
 0x18a   : > { %v1816_v4 = vsel %vm1811_vm9, %v1810_v23, %v1629_v6  ;;  %v1851_v1 = vsel %vm1811_vm9, %v1846_v26, %v1769_v42  ;;  %v1803_v9 = vsel %vm1799_vm7, %v1797_v27, %v2708_v24  ;;  %v1311_v23 = vrot.slane %v4923_v0, 4  ;;  %v1853_v26 = vld [vmem:[%s4733_s2] sm:$0x7] }
 0x18b   : > { %2441 = vmatpush.msk.msra.mxu0 %vm1863_vm10, %v1816_v4  ;;  %2443 = vmatpush.msk.msra.mxu1 %vm1863_vm10, %v1851_v1  ;;  %v1809_v19 = vsel %vm1805_vm8, %v1803_v9, %v2748_v10  ;;  %v2723_v42 = vunpack.i.h.bf16 %v4424_v53  ;;  %v2722_v4 = vunpack.i.l.bf16 %v4424_v53  ;;  %v4924_v1 = vld [vmem:[#allocation39_spill] sm:$0xff]  ;;  %v1789_v9 = vsel %vm1787_vm5, %v4413_v44, %v2753_v3 }
 0x18c   : > { %v1312_v48 = vsel %vm487_vm2, %v1311_v23, %v4924_v1  ;;  %1856 = vperm.xlu1 %2824, %v1853_v26   ;;  %v584_v23 = vsel %vm487_vm2, %v583_v46, %v4251_v45 }
 0x18d   : > { %v1819_v53 = vsel %vm1775_vm3, %v1312_v48, %v2717_v25  ;;  %v1784_v40 = vsel %vm1781_vm4, %v1778_v47, %v2723_v42  ;;  %v2768_v48 = vunpack.i.h.bf16 %v4453_v12  ;;  %v2783_v47 = vunpack.i.h.bf16 %v4479_v2 }
 0x18e   : > { %v1824_v35 = vsel %vm1781_vm4, %v1819_v53, %v2722_v4  ;;  %v1790_v55 = vsel %vm1787_vm5, %v1784_v40, %v2733_v29  ;;  %v2782_v53 = vunpack.i.l.bf16 %v4479_v2 }
 0x18f   : > { %v1829_v57 = vsel %vm1787_vm5, %v1824_v35, %v2732_v8 }
 0x190   : > { %v4506_v33 = vpop.permute.xlu1 %2795 }
 0x191   : > { %v4449_v50 = vpop.permute.xlu2 %2755  ;;  %v2797_v12 = vunpack.i.l.bf16 %v4506_v33 }
 0x192   : > { %v4451_v30 = vpop.permute.xlu0 %2735  ;;  %v2758_v49 = vunpack.i.h.bf16 %v4449_v50  ;;  %v2757_v56 = vunpack.i.l.bf16 %v4449_v50 }
 0x193   : > { %v2738_v31 = vunpack.i.h.bf16 %v4451_v30  ;;  %v2737_v14 = vunpack.i.l.bf16 %v4451_v30 }
 0x195   : > { %v1796_v30 = vsel %vm1793_vm6, %v1790_v55, %v2738_v31  ;;  %v1834_v62 = vsel %vm1793_vm6, %v1829_v57, %v2737_v14  ;;  %v2798_v14 = vunpack.i.h.bf16 %v4506_v33  ;;  %v1852_v33 = vld [vmem:[%s4732_s1] sm:$0x7] }
 0x196   : > { %v1802_v10 = vsel %vm1799_vm7, %v1796_v30, %v2758_v49 }
 0x198   : > { %v2811_v7 = vpop.permute.xlu1 %2810 }
 0x199   : > { %v4463_v63 = vpop.permute.xlu2 %2770 }
 0x19a   : > { %v4469_v43 = vpop.permute.xlu0 %2740  ;;  %v2773_v58 = vunpack.i.h.bf16 %v4463_v63  ;;  %v2772_v41 = vunpack.i.l.bf16 %v4463_v63  ;;  %v1839_v63 = vsel %vm1799_vm7, %v1834_v62, %v2757_v56 }
 0x19c   : > { %v1795_v61 = vsel %vm1793_vm6, %v1789_v9, %v2773_v58 }
 0x1a1   : > { %v4487_v22 = vpop.permute.xlu2 %2785 }
 0x1a2   : > { %v2761_v13 = vpop.permute.xlu0 %2760  ;;  %v2788_v38 = vunpack.i.h.bf16 %v4487_v22  ;;  %v2787_v27 = vunpack.i.l.bf16 %v4487_v22  ;;  %v2743_v22 = vunpack.i.h.bf16 %v4469_v43 }
 0x1a3   : > { %v2763_v60 = vunpack.i.h.bf16 %v2761_v13  ;;  %v2762_v16 = vunpack.i.l.bf16 %v2761_v13  ;;  %v1833_v13 = vsel %vm1793_vm6, %v1828_v52, %v2772_v41 }
 0x1a4   : > { %v1801_v44 = vsel %vm1799_vm7, %v1795_v61, %v2788_v38  ;;  %v1838_v36 = vsel %vm1799_vm7, %v1833_v13, %v2787_v27  ;;  %v1776_v42 = vsel %vm1775_vm3, %v584_v23, %v2743_v22 }
 0x1a5   : > { %v1815_v37 = vsel %vm1811_vm9, %v1809_v19, %v2763_v60  ;;  %v1850_v6 = vsel %vm1811_vm9, %v1845_v17, %v2762_v16  ;;  %v2742_v60 = vunpack.i.l.bf16 %v4469_v43  ;;  %v1782_v15 = vsel %vm1781_vm4, %v1776_v42, %v2768_v48 }
 0x1a6   : > { %1882 = vmatpush.msra.mxu0 %v1815_v37  ;;  %1902 = vmatpush.msra.mxu1 %v1850_v6  ;;  %v2813_v37 = vunpack.i.h.bf16 %v2811_v7  ;;  %v2812_v6 = vunpack.i.l.bf16 %v2811_v7  ;;  %v1788_v35 = vsel %vm1787_vm5, %v1782_v15, %v2783_v47 }
 0x1a7   : > { %v1817_v4 = vsel %vm1775_vm3, %v4337_v5, %v2742_v60  ;;  %v1794_v29 = vsel %vm1793_vm6, %v1788_v35, %v2798_v14 }
 0x1a8   : > { %v1822_v45 = vsel %vm1781_vm4, %v1817_v4, %v2767_v28 }
 0x1a9   : > { %v2801_v20 = vpop.permute.xlu2 %2800  ;;  %v1827_v31 = vsel %vm1787_vm5, %v1822_v45, %v2782_v53 }
 0x1aa   : > { %v2776_v34 = vpop.permute.xlu0 %2775  ;;  %v2803_v50 = vunpack.i.h.bf16 %v2801_v20  ;;  %v2802_v54 = vunpack.i.l.bf16 %v2801_v20  ;;  %v1832_v8 = vsel %vm1793_vm6, %v1827_v31, %v2797_v12 }
 0x1ab   : > { %v2778_v24 = vunpack.i.h.bf16 %v2776_v34  ;;  %v2777_v21 = vunpack.i.l.bf16 %v2776_v34 }
 0x1ac   : > { %v1807_v11 = vsel %vm1805_vm8, %v1801_v44, %v2803_v50  ;;  %v1843_v25 = vsel %vm1805_vm8, %v1838_v36, %v2802_v54 }
 0x1ad   : > { %v1808_v19 = vsel %vm1805_vm8, %v1802_v10, %v2778_v24  ;;  %v1844_v17 = vsel %vm1805_vm8, %v1839_v63, %v2777_v21  ;;  %v1813_v26 = vsel %vm1811_vm9, %v1807_v11, %v2813_v37  ;;  %v1848_v1 = vsel %vm1811_vm9, %v1843_v25, %v2812_v6  ;;  %v4926_v25 = vld [vmem:[#allocation15_spill] sm:$0xff] }
 0x1b1   : > { %v2816_v34 = vpop.permute.xlu2 %2815 }
 0x1b2   : > { %v2791_v16 = vpop.permute.xlu0 %2790  ;;  %v2818_v2 = vunpack.i.h.bf16 %v2816_v34  ;;  %v2817_v49 = vunpack.i.l.bf16 %v2816_v34 }
 0x1b3   : > { %v2793_v18 = vunpack.i.h.bf16 %v2791_v16  ;;  %v2792_v39 = vunpack.i.l.bf16 %v2791_v16 }
 0x1b5   : > { %v1814_v0 = vsel %vm1811_vm9, %v1808_v19, %v2793_v18  ;;  %v1849_v43 = vsel %vm1811_vm9, %v1844_v17, %v2792_v39 }
 0x1b6   : > { %1883 = vmatpush.msra.mxu0 %v1814_v0  ;;  %1903 = vmatpush.msra.mxu1 %v1849_v43 }
 0x1b8   : > { %1884 = vmatpush.msra.mxu0 %v1813_v26  ;;  %1904 = vmatpush.msra.mxu1 %v1848_v1 }
 0x1ba   : > { %v2806_v59 = vpop.permute.xlu0 %2805 }
 0x1bb   : > { %v2808_v5 = vunpack.i.h.bf16 %v2806_v59  ;;  %v2807_v40 = vunpack.i.l.bf16 %v2806_v59 }
 0x1bd   : > { %v1800_v3 = vsel %vm1799_vm7, %v1794_v29, %v2808_v5  ;;  %v1837_v32 = vsel %vm1799_vm7, %v1832_v8, %v2807_v40 }
 0x1be   : > { %v1806_v20 = vsel %vm1805_vm8, %v1800_v3, %v2818_v2  ;;  %v1842_v30 = vsel %vm1805_vm8, %v1837_v32, %v2817_v49 }
 0x1c2   : > { %v2821_v56 = vpop.permute.xlu0 %2820 }
 0x1c3   : > { %v2823_v55 = vunpack.i.h.bf16 %v2821_v56  ;;  %v2822_v57 = vunpack.i.l.bf16 %v2821_v56 }
 0x1c5   : > { %v1812_v62 = vsel %vm1811_vm9, %v1806_v20, %v2823_v55  ;;  %v1847_v58 = vsel %vm1811_vm9, %v1842_v30, %v2822_v57 }
 0x1c6   : > { %1885 = vmatpush.msra.mxu0 %v1812_v62  ;;  %1905 = vmatpush.msra.mxu1 %v1847_v58 }
 0x1c7   : > { %2442 = vmatmul.msk.f32.vlgmr.msra.gmra.mxu0 %vm1859_vm11, %v1852_v33  ;;  %2444 = vmatmul.msk.f32.vlgmr.msra.gmra.mxu1 %vm1859_vm11, %v1852_v33 }
 0x1fe   : > { %v1857_v41 = vpop.permute.xlu1 %1856 }
 0x244   : > { %v1887_v46 = vpop.f32.mrf.mxu0  ;;  %v1907_v38 = vpop.f32.mrf.mxu1 }
 0x245   : > { %v1888_v27 = vadd.f32 %v1887_v46, %v1857_v41  ;;  %v1908_v50 = vadd.f32 %v1907_v38, %v1857_v41 }
 0x247   : > { %v2835_v54 = vpack.i.bf16 %v1888_v27, %v1908_v50 }
 0x249   : > { %2836 = vrot.lane.b32.xlu1 %v2835_v54, %s2945_s10  ;;  %2831 = vrot.lane.b32.xlu0 %v2835_v54, %s2946_s12 }
 0x24a   : > { %2826 = vrot.lane.b32.xlu2 %v2835_v54, %s2944_s9 }
 0x251   : > { %2851 = vrot.lane.b32.xlu1 %v2835_v54, %s2943_s8  ;;  %2846 = vrot.lane.b32.xlu0 %v2835_v54, %s2947_s13 }
 0x252   : > { %2841 = vrot.lane.b32.xlu2 %v2835_v54, %s2941_s27  ;;  %s2440_s27 = sshll.u32 %s4596_s21, 3  ;;  %s2305_s21 = scalar_lea.sflag [#allocation3], %s245_s15 }
 0x253   : > { %s4620_s9 = scalar_lea.vmem %s4734_s3, %s2440_s27 }
 0x25a   : > { %2856 = vrot.lane.b32.xlu2 %v2835_v54, %s2942_s30 }
 0x2a4   : > { %v2827_v24 = vpop.permute.xlu2 %2826 }
 0x2a5   : > { %v2829_v10 = vunpack.i.h.bf16 %v2827_v24  ;;  %v2828_v7 = vunpack.i.l.bf16 %v2827_v24 }
 0x2a7   : > { %v1972_v60 = vrot.slane %v2829_v10, 4  ;;  %v2026_v44 = vrot.slane %v2828_v7, 4 }
 0x2ac   : > { %v2842_v21 = vpop.permute.xlu2 %2841 }
 0x2ad   : > { %v2843_v52 = vunpack.i.l.bf16 %v2842_v21  ;;  %v2844_v61 = vunpack.i.h.bf16 %v2842_v21 }
 0x2af   : > { %v2020_v13 = vrot.slane %v2843_v52, 4  ;;  %v1966_v36 = vrot.slane %v2844_v61, 4 }
 0x2b4   : > { %v2857_v9 = vpop.permute.xlu2 %2856 }
 0x2b5   : > { %v2858_v63 = vunpack.i.l.bf16 %v2857_v9  ;;  %v2859_v22 = vunpack.i.h.bf16 %v2857_v9 }
 0x2b7   : > { %v2021_v16 = vsel %vm487_vm2, %v2020_v13, %v2858_v63  ;;  %v1967_v11 = vsel %vm487_vm2, %v1966_v36, %v2859_v22 }
 0x2b8   : > { %v2025_v37 = vperm.slane %v2021_v16, %v4926_v25  ;;  %v1971_v1 = vperm.slane %v1967_v11, %v4926_v25  ;;  %v2063_v16 = vld [vmem:[%s4620_s9 + $0x8] sm:$0xff]  ;;  %v2062_v11 = vld [vmem:[%s4620_s9] sm:$0xff] }
 0x2ba   : > { %v2046_v48 = vrot.slane %v2025_v37, 4  ;;  %v1992_v3 = vrot.slane %v1971_v1, 4 }
 0x2bb   : > { %v2837_v18 = vpop.permute.xlu1 %2836  ;;  %v2832_v39 = vpop.permute.xlu0 %2831 }
 0x2bc   : > { %v2839_v19 = vunpack.i.h.bf16 %v2837_v18  ;;  %v2838_v17 = vunpack.i.l.bf16 %v2837_v18  ;;  %v2834_v42 = vunpack.i.h.bf16 %v2832_v39  ;;  %v2833_v4 = vunpack.i.l.bf16 %v2832_v39 }
 0x2be   : > { %v1973_v6 = vsel %vm487_vm2, %v1972_v60, %v2839_v19  ;;  %v2027_v0 = vsel %vm487_vm2, %v2026_v44, %v2838_v17  ;;  %v1960_v15 = vrot.slane %v2834_v42, 4  ;;  %v2014_v45 = vrot.slane %v2833_v4, 4 }
 0x2bf   : > { %v1977_v43 = vperm.slane %v1973_v6, %v4926_v25  ;;  %v2031_v23 = vperm.slane %v2027_v0, %v4926_v25  ;;  %v2064_v6 = vld [vmem:[%s4620_s9 + $0x10] sm:$0xff]  ;;  %v2067_v0 = vld [vmem:[%s4735_s4 + $0x8] sm:$0xff] }
 0x2c0   : > { %2483 = vmatpush.msra.mxu3 %v2067_v0  ;;  %2135 = vmatpush.msrb.mxu1 %v2067_v0 }
 0x2c1   : > { %v2044_v26 = vrot.slane %v2031_v23, 4  ;;  %v1990_v28 = vrot.slane %v1977_v43, 4  ;;  %v2047_v14 = vsel %vm487_vm2, %v2031_v23, %v2046_v48  ;;  %v1993_v46 = vsel %vm487_vm2, %v1977_v43, %v1992_v3  ;;  %v2066_v43 = vld [vmem:[%s4735_s4] sm:$0xff] }
 0x2c2   : > { %v2055_v20 = vperm.slane %v2047_v14, %v3301_v51  ;;  %v2001_v7 = vperm.slane %v1993_v46, %v3301_v51  ;;  %2484 = vmatpush.msra.mxu3 %v2066_v43  ;;  %2136 = vmatpush.msrb.mxu1 %v2066_v43 }
 0x2c3   : > { %v2852_v59 = vpop.permute.xlu1 %2851  ;;  %v2847_v47 = vpop.permute.xlu0 %2846  ;;  %v2045_v31 = vsel %vm487_vm2, %v2044_v26, %v2025_v37  ;;  %v1991_v49 = vsel %vm487_vm2, %v1990_v28, %v1971_v1 }
 0x2c4   : > { %v2854_v53 = vunpack.i.h.bf16 %v2852_v59  ;;  %v2853_v5 = vunpack.i.l.bf16 %v2852_v59  ;;  %v2849_v40 = vunpack.i.h.bf16 %v2847_v47  ;;  %v2848_v35 = vunpack.i.l.bf16 %v2847_v47  ;;  %2284 = vmatpush.msrb.mxu3 %v2067_v0  ;;  %2209 = vmatpush.msra.mxu1 %v2067_v0 }
 0x2c5   : > { %v2051_v57 = vperm.slane %v2045_v31, %v3301_v51  ;;  %v1997_v41 = vperm.slane %v1991_v49, %v3301_v51  ;;  %v2060_v10 = vrot.slane %v2055_v20, 4  ;;  %v2006_v17 = vrot.slane %v2001_v7, 4 }
 0x2c6   : > { %v1954_v12 = vrot.slane %v2854_v53, 4  ;;  %v2008_v34 = vrot.slane %v2853_v5, 4  ;;  %v1961_v29 = vsel %vm487_vm2, %v1960_v15, %v2849_v40  ;;  %v2015_v8 = vsel %vm487_vm2, %v2014_v45, %v2848_v35  ;;  %2285 = vmatpush.msrb.mxu3 %v2066_v43  ;;  %2210 = vmatpush.msra.mxu1 %v2066_v43 }
 0x2c7   : > { %v1965_v32 = vperm.slane %v1961_v29, %v4926_v25  ;;  %v2019_v2 = vperm.slane %v2015_v8, %v4926_v25  ;;  %v2056_v21 = vrot.slane %v2051_v57, 4  ;;  %v2002_v22 = vrot.slane %v1997_v41, 4 }
 0x2c8   : > { %v1955_v56 = vsel %vm487_vm2, %v1954_v12, %v1888_v27  ;;  %v2009_v55 = vsel %vm487_vm2, %v2008_v34, %v1908_v50 }
 0x2c9   : > { %v1959_v30 = vperm.slane %v1955_v56, %v4926_v25  ;;  %v2013_v33 = vperm.slane %v2009_v55, %v4926_v25  ;;  %v1978_v62 = vrot.slane %v1965_v32, 4  ;;  %v2032_v58 = vrot.slane %v2019_v2, 4 }
 0x2cb   : > { %v1980_v38 = vrot.slane %v1959_v30, 4  ;;  %v2034_v54 = vrot.slane %v2013_v33, 4  ;;  %v2033_v27 = vsel %vm487_vm2, %v2032_v58, %v2013_v33  ;;  %v1979_v50 = vsel %vm487_vm2, %v1978_v62, %v1959_v30 }
 0x2cc   : > { %v2039_v24 = vperm.slane %v2033_v27, %v3301_v51  ;;  %v1985_v9 = vperm.slane %v1979_v50, %v3301_v51 }
 0x2cd   : > { %v2035_v52 = vsel %vm487_vm2, %v2019_v2, %v2034_v54  ;;  %v1981_v63 = vsel %vm487_vm2, %v1965_v32, %v1980_v38 }
 0x2ce   : > { %v2057_v61 = vsel %vm487_vm2, %v2056_v21, %v2039_v24  ;;  %v2058_v13 = vrot.slane %v2039_v24, 4  ;;  %v2043_v60 = vperm.slane %v2035_v52, %v3301_v51  ;;  %v2004_v18 = vrot.slane %v1985_v9, 4 }
 0x2cf   : > { %2094 = vmatpush.msrb.mxu0 %v2057_v61  ;;  %2481 = vmatpush.msra.mxu2 %v2057_v61  ;;  %v2003_v39 = vsel %vm487_vm2, %v2002_v22, %v1985_v9  ;;  %v1989_v19 = vperm.slane %v1981_v63, %v3301_v51  ;;  %v2065_v51 = vld [vmem:[%s4620_s9 + $0x18] sm:$0xff] }
 0x2d0   : > { %v2059_v44 = vsel %vm487_vm2, %v2051_v57, %v2058_v13  ;;  %v2061_v36 = vsel %vm487_vm2, %v2060_v10, %v2043_v60  ;;  %v2005_v25 = vsel %vm487_vm2, %v1997_v41, %v2004_v18 }
 0x2d1   : > { %2095 = vmatpush.msrb.mxu0 %v2003_v39  ;;  %2482 = vmatpush.msra.mxu2 %v2003_v39  ;;  %v2007_v37 = vsel %vm487_vm2, %v2006_v17, %v1989_v19 }
 0x2d2   : > { %2446 = vmatmul.msk.f32.vlgmr.msra.gmra.mxu2 %vm1775_vm3, %v2063_v16  ;;  %2445 = vmatmul.msk.f32.vlgmr.msrb.gmra.mxu0 %vm1775_vm3, %v2062_v11 }
 0x2d3   : > { %2168 = vmatpush.msra.mxu0 %v2059_v44  ;;  %2243 = vmatpush.msrb.mxu2 %v2061_v36 }
 0x2d5   : > { %2169 = vmatpush.msra.mxu0 %v2005_v25  ;;  %2244 = vmatpush.msrb.mxu2 %v2007_v37 }
 0x2da   : > { %2447 = vmatmul.msk.f32.gmra.mxu2 %vm1775_vm3, %v2064_v6  ;;  %2453 = vmatmul.msk.f32.vlgmr.msra.gmra.mxu0 %vm1775_vm3, %v2062_v11 }
 0x2e2   : > { %2448 = vmatmul.msk.f32.gmra.mxu2 %vm1775_vm3, %v2065_v51  ;;  %2454 = vmatmul.msk.f32.gmra.mxu0 %vm1775_vm3, %v2063_v16 }
 0x2ea   : > { %2465 = vmatmul.msk.f32.vlgmr.msrb.gmra.mxu2 %vm1775_vm3, %v2062_v11  ;;  %2455 = vmatmul.msk.f32.gmra.mxu0 %vm1775_vm3, %v2064_v6 }
 0x2f2   : > { %2466 = vmatmul.msk.f32.gmra.mxu2 %vm1775_vm3, %v2063_v16  ;;  %2456 = vmatmul.msk.f32.gmra.mxu0 %vm1775_vm3, %v2065_v51 }
 0x2fa   : > { %2467 = vmatmul.msk.f32.gmra.mxu2 %vm1775_vm3, %v2064_v6 }
 0x302   : > { %2468 = vmatmul.msk.f32.gmra.mxu2 %vm1775_vm3, %v2065_v51 }
 0x34f   : > { %v2097_v23 = vpop.f32.mrf.mxu0 }
 0x350   : > { %2449 = vmatmul.msk.f32.vlgmr.msrb.gmra.mxu1 %vm1775_vm3, %v2097_v23 }
 0x355   : > { %v2100_v42 = vpop.f32.mrf.mxu2 }
 0x356   : > { %2450 = vmatmul.msk.f32.vlgmr.msra.gmra.mxu3 %vm1775_vm3, %v2100_v42 }
 0x357   : > { %v2171_v4 = vpop.f32.mrf.mxu0 }
 0x358   : > { %2457 = vmatmul.msk.f32.vlgmr.msra.gmra.mxu1 %vm1775_vm3, %v2171_v4 }
 0x35d   : > { %v2103_v26 = vpop.f32.mrf.mxu2 }
 0x35e   : > { %2451 = vmatmul.msk.f32.gmra.mxu3 %vm1775_vm3, %v2103_v26 }
 0x35f   : > { %v2174_v1 = vpop.f32.mrf.mxu0 }
 0x360   : > { %2458 = vmatmul.msk.f32.gmra.mxu1 %vm1775_vm3, %v2174_v1 }
 0x365   : > { %v2106_v48 = vpop.f32.mrf.mxu2 }
 0x366   : > { %2452 = vmatmul.msk.f32.gmra.mxu3 %vm1775_vm3, %v2106_v48 }
 0x367   : > { %v2177_v28 = vpop.f32.mrf.mxu0 }
 0x368   : > { %2459 = vmatmul.msk.f32.gmra.mxu1 %vm1775_vm3, %v2177_v28 }
 0x36d   : > { %v2246_v15 = vpop.f32.mrf.mxu2 }
 0x36e   : > { %2469 = vmatmul.msk.f32.vlgmr.msrb.gmra.mxu3 %vm1775_vm3, %v2246_v15 }
 0x36f   : > { %v2180_v45 = vpop.f32.mrf.mxu0 }
 0x370   : > { %2460 = vmatmul.msk.f32.gmra.mxu1 %vm1775_vm3, %v2180_v45 }
 0x375   : > { %v2249_v59 = vpop.f32.mrf.mxu2 }
 0x376   : > { %2470 = vmatmul.msk.f32.gmra.mxu3 %vm1775_vm3, %v2249_v59 }
 0x37d   : > { %v2252_v47 = vpop.f32.mrf.mxu2 }
 0x37e   : > { %2471 = vmatmul.msk.f32.gmra.mxu3 %vm1775_vm3, %v2252_v47 }
 0x385   : > { %v2255_v53 = vpop.f32.mrf.mxu2 }
 0x386   : > { %2472 = vmatmul.msk.f32.gmra.mxu3 %vm1775_vm3, %v2255_v53 }
 0x3cd   : > { %v2138_v5 = vpop.f32.mrf.mxu1 }
 0x3ce   : > { %2150 = vst.msk [vmem:[%s247_s17] sm:$0xff] %vm1793_vm6, %v2138_v5 }
 0x3d5   : > { %v2212_v40 = vpop.f32.mrf.mxu1 }
 0x3d6   : > { %2461 = vst.msk [vmem:[%s247_s17 + $0x20] sm:$0xff] %vm1793_vm6, %v2212_v40 }
 0x3d9   : > { %v2141_v35 = vpop.f32.mrf.mxu3 }
 0x3da   : > { %2151 = vst.msk [vmem:[%s247_s17 + $0x8] sm:$0xff] %vm1793_vm6, %v2141_v35 }
 0x3dd   : > { %v2215_v31 = vpop.f32.mrf.mxu1 }
 0x3de   : > { %2462 = vst.msk [vmem:[%s247_s17 + $0x28] sm:$0xff] %vm1793_vm6, %v2215_v31 }
 0x3e1   : > { %v2144_v14 = vpop.f32.mrf.mxu3 }
 0x3e2   : > { %2152 = vst.msk [vmem:[%s247_s17 + $0x10] sm:$0xff] %vm1793_vm6, %v2144_v14 }
 0x3e5   : > { %v2218_v12 = vpop.f32.mrf.mxu1 }
 0x3e6   : > { %2463 = vst.msk [vmem:[%s247_s17 + $0x30] sm:$0xff] %vm1793_vm6, %v2218_v12 }
 0x3e9   : > { %v2147_v34 = vpop.f32.mrf.mxu3 }
 0x3ea   : > { %2153 = vst.msk [vmem:[%s247_s17 + $0x18] sm:$0xff] %vm1793_vm6, %v2147_v34 }
 0x3ed   : > { %v2221_v29 = vpop.f32.mrf.mxu1 }
 0x3ee   : > { %2464 = vst.msk [vmem:[%s247_s17 + $0x38] sm:$0xff] %vm1793_vm6, %v2221_v29 }
 0x3f1   : > { %v2287_v8 = vpop.f32.mrf.mxu3 }
 0x3f2   : > { %2473 = vst.msk [vmem:[%s247_s17 + $0x40] sm:$0xff] %vm1793_vm6, %v2287_v8 }
 0x3f9   : > { %v2290_v3 = vpop.f32.mrf.mxu3 }
 0x3fa   : > { %2474 = vst.msk [vmem:[%s247_s17 + $0x48] sm:$0xff] %vm1793_vm6, %v2290_v3 }
 0x401   : > { %v2293_v32 = vpop.f32.mrf.mxu3 }
 0x402   : > { %2475 = vst.msk [vmem:[%s247_s17 + $0x50] sm:$0xff] %vm1793_vm6, %v2293_v32 }
 0x409   : > { %v2296_v2 = vpop.f32.mrf.mxu3 }
 0x40a   : > { %2476 = vst.msk [vmem:[%s247_s17 + $0x58] sm:$0xff] %vm1793_vm6, %v2296_v2 }
 0x40b   : > { %s2487_s27 = smul.u32 24, %s2923_s22  ;;  %s2329_s30 = sshll.u32 %s247_s17, 4  ;;  %s2330_s30 = int_to_ptr.vmem [resolvable:$true] %s2329_s30 }
 0x40c   : > { %s2949_s9 = smov 512   ;;  %s2950_s15 = smov 1024  }
 0x40d   : > { %s2316_s8 = sadd.s32 %s2487_s27, %s4588_s26  ;;  %2488 = sst [smem:[#allocation5]] (%p3037_p3), %s2949_s9 }
 0x40e   : > { %s2478_s10 = sshll.u32 %s2316_s8, 3  ;;  %2489 = sst [smem:[#allocation5 + $0x1]] (%p3037_p3), %s2950_s15 }
 0x40f   : > { %s2318_s14 = scalar_lea.hbm %s4736_s5, %s2478_s10  ;;  %s2951_s22 = smov 4  }
 0x410   : > { %s2331_s16 = sshll.u32 %s2318_s14, 4  ;;  %2490 = sst [smem:[#allocation5 + $0x2]] (%p3037_p3), %s2951_s22  ;;  %s2332_s16 = int_to_ptr.hbm [resolvable:$true] %s2331_s16 }
 0x411   : > { %s2952_s17 = smov 128   ;;  %s2953_s26 = smov 8  }
 0x412   : > { %2491 = sst [smem:[#allocation5 + $0x3]] (%p3037_p3), %s2952_s17  ;;  %s2954_s27 = smov [#allocation4]  }
 0x413   : > { %2492 = sst [smem:[#allocation5 + $0x4]] (%p3037_p3), %s2952_s17  ;;  %s2955_s8 = smov 0  }
 0x414   : > { %2493 = sst [smem:[#allocation5 + $0x5]] (%p3037_p3), %s2953_s26 }
 0x415   : > { %2494 = dma.general (%p3037_p3), %s2330_s30, 1536, %s2332_s16, %s2305_s21, %s2954_s27, [#allocation5], %s2955_s8, 0  }
 0x416 PF: > { %p2500_p0 = scmp.ge.s32.totalorder %s2935_s25, 2  ;;  %s2359_s9 = sand.u32 1, %s2907_s18  }
 0x417   : > { %s2360_s10 = scalar_lea.sflag [#allocation3], %s2359_s9 }
 0x418   : > { %p2497_p1 = pnand %p2500_p0, %p3046_p8 }
 0x41a   : > { %p2498_p2 = pneg %p2497_p1 }
 0x41c   : > { %2902 = dma.done.wait (%p2498_p2), %s2360_s10, 1536  }
 0x41d   : > { %2904 = vsyncadd (%p2498_p2), %s2360_s10, 4294965760  ;;  %s18_s25 = sadd.s32 1, %s2935_s25   ;;  %s4927_s18 = smov %s2911_s19 }
 0x41e   : > { %p15_p4 = scmp.ge.s32.totalorder %s18_s25, 6   ;;  %s4928_s19 = smov %s2915_s20 }
 0x41f   : > { %s4929_s20 = smov %s3055_s11  ;;  %s4930_s21 = smov %s2927_s23 }
 0x420   : > { %s4931_s22 = smov %s2931_s24  ;;  %s4932_s23 = smov %s4935_s28 }
 0x421   : > { %s4933_s24 = smov %s4939_s29  ;;  %17 = sbr.rel (!%p15_p4) target bundleno = 5 (0x5), region = 85 }
 0x426   :  { %2366 = vsyncpa [#allocation3], 1 }
 0x427   :  { %2368 = vsyncpa [#allocation3 + $0x1], 1 }

</bundles_post_ra>
